<compile_context>
chip_gen: v7x
topology: tpu7x:2x2x1
jax: 0.10.0
libtpu: 0.0.40
codegen_flags: <defaults>
</compile_context>

<pallas_src>
import functools

import jax
import jax.numpy as jnp
from jax import lax
from jax.experimental import pallas as pl
from jax.experimental.pallas import tpu as pltpu


# Cin threshold above which the per-tap accumulating-dot path is used.
_PER_TAP_MIN_CIN = 64


def _fused_conv3x3_kernel(x_ref, w_ref, b_ref, o_ref):
    """Fused 3x3 'same' convolution for one batch element (both SSD heads).

    x_ref: (1, H, W, Cin)          unpadded NHWC input tile (f32)
    w_ref: (9, Cin, Cpad)  bf16    per-tap weights   [per-tap path]
           (9*Cin, Cpad)   bf16    im2col weights    [tiny-Cin path]
    b_ref: (1, Cpad)       f32     fused bias row (pad columns are zero)
    o_ref: (1, H*W, Cpad)          spatially-flattened, lane-dense output
    """
    H, W, Cin = x_ref.shape[1], x_ref.shape[2], x_ref.shape[3]
    Cpad = o_ref.shape[-1]
    compute_dtype = w_ref.dtype

    # Build the zero 'same' border in VMEM (no padded HBM copy was made).
    x = x_ref[0]                                            # (H, W, Cin) f32
    zrow = jnp.zeros((1, W, Cin), x.dtype)
    xp = jnp.concatenate([zrow, x, zrow], axis=0)           # (H+2, W, Cin)
    zcol = jnp.zeros((H + 2, 1, Cin), x.dtype)
    xp = jnp.concatenate([zcol, xp, zcol], axis=1)          # (H+2, W+2, Cin)

    if w_ref.ndim == 3:
        # Per-tap accumulating dots: no 9x im2col patch in VMEM, K = Cin >= 64
        # keeps the MXU occupied; bf16 operands, f32 accumulation.
        acc = jnp.zeros((H * W, Cpad), jnp.float32)
        for t in range(9):
            kh, kw = t // 3, t % 3
            tap = xp[kh:kh + H, kw:kw + W, :].reshape(H * W, Cin)
            acc = acc + jnp.dot(tap.astype(compute_dtype), w_ref[t],
                                preferred_element_type=jnp.float32)
    else:
        # Tiny-Cin path: one wide-K matmul over the im2col patch
        # (K axis ordered (kh, kw, cin) to match the fused weight layout).
        cols = [xp[kh:kh + H, kw:kw + W, :]
                for kh in range(3) for kw in range(3)]
        patch = jnp.concatenate(cols, axis=-1).reshape(H * W, 9 * Cin)
        acc = jnp.dot(patch.astype(compute_dtype), w_ref[...],
                      preferred_element_type=jnp.float32)

    acc = acc + b_ref[...]                                  # bias epilogue
    o_ref[0] = acc.astype(o_ref.dtype)


def _fused_conv3x3(x_nhwc, w, b_row):
    """x_nhwc: (N,H,W,Cin); w: (9,Cin,Cpad) or (9*Cin,Cpad); b: (1,Cpad)."""
    N, H, W, Cin = x_nhwc.shape
    Cpad = w.shape[-1]

    return pl.pallas_call(
        _fused_conv3x3_kernel,
        out_shape=jax.ShapeDtypeStruct((N, H * W, Cpad), x_nhwc.dtype),
        grid=(N,),
        in_specs=[
            pl.BlockSpec((1, H, W, Cin), lambda n: (n, 0, 0, 0)),
            pl.BlockSpec(w.shape, lambda n: (0,) * w.ndim),
            pl.BlockSpec((1, Cpad), lambda n: (0, 0)),
        ],
        out_specs=pl.BlockSpec((1, H * W, Cpad), lambda n: (n, 0, 0)),
        compiler_params=pltpu.CompilerParams(
            dimension_semantics=("parallel",),
            # above the 16/32 MiB scoped defaults, below v7x's 64 MiB physical
            vmem_limit_bytes=48 * 1024 * 1024),
    )(x_nhwc, w, b_row)


def prepare_fused_params(params, compute_dtype=jnp.bfloat16):
    """One-time (outside jit) fusion of the two conv heads.

    Returns (fused, (c1, c2)):
      fused["w"]: (9, Cin, Cpad) compute_dtype, Cout zero-padded to mult of 128
      fused["b"]: (1, Cpad)      f32
    """
    w1, w2 = params["w1"], params["w2"]        # (3,3,Cin,c1), (3,3,Cin,c2)
    b1, b2 = params["b1"], params["b2"]
    cin = w1.shape[2]
    c1, c2 = int(w1.shape[-1]), int(w2.shape[-1])
    c_total = c1 + c2
    c_pad = ((c_total + 127) // 128) * 128

    w = jnp.concatenate([w1, w2], axis=-1)                  # (3,3,Cin,ct)
    w = jnp.pad(w, ((0, 0), (0, 0), (0, 0), (0, c_pad - c_total)))
    w = w.reshape(9, cin, c_pad).astype(compute_dtype)      # K order (kh,kw,cin)

    b = jnp.concatenate([b1, b2])
    b = jnp.pad(b, (0, c_pad - c_total)).reshape(1, c_pad).astype(jnp.float32)
    return dict(w=w, b=b), (c1, c2)


def _outconv_nhwc(fused, x_nhwc, k, c1, c2):
    N, H, W, Cin = x_nhwc.shape
    w, b = fused["w"], fused["b"]
    Cpad = w.shape[-1]
    c_total = c1 + c2

    if Cin >= _PER_TAP_MIN_CIN:
        w_call = w                                          # (9, Cin, Cpad)
    else:
        w_call = w.reshape(9 * Cin, Cpad)                   # free (contiguous)

    y = _fused_conv3x3(x_nhwc, w_call, b)                   # (N, H*W, Cpad)

    # Drop the lane padding BEFORE the per-head split so class/box channels
    # do not interleave; flatten_conv on NHWC is then a plain reshape.
    y = y[..., :c_total]
    y1 = y[..., :c1].reshape(N, H * W * k, c1 // k)
    y2 = y[..., c1:].reshape(N, H * W * k, c2 // k)
    return [y1, y2]


@functools.partial(jax.jit, static_argnames=("k", "c1", "c2"))
def outconv_forward_nhwc(fused, x_nhwc, *, k, c1, c2):
    """Forward pass for callers that already hold NHWC input (no relayout)."""
    return _outconv_nhwc(fused, x_nhwc, k, c1, c2)


@functools.partial(jax.jit, static_argnames=("k", "c1", "c2"))
def outconv_forward(fused, x_nchw, *, k, c1, c2):
    """Forward pass of OutConv. x_nchw: (N, nin, H, W) float32 (PyTorch layout)."""
    x_nhwc = jnp.transpose(x_nchw, (0, 2, 3, 1))
    return _outconv_nhwc(fused, x_nhwc, k, c1, c2)


def init_outconv_params(key, k, nin, num_classes, bias):
    """Deterministic synthetic parameters matching OutConv.__init__ shapes.

    Weights stored tap-major (3,3,Cin,Cout) — a PyTorch (Cout,Cin,3,3) tensor
    converts via transpose(2,3,1,0).
    """
    cout1 = num_classes * k
    cout2 = 4 * k
    k1, k2, k3 = jax.random.split(key, 3)
    w1 = 0.1 * jax.random.normal(k1, (3, 3, nin, cout1), jnp.float32)
    w2 = 0.1 * jax.random.normal(k2, (3, 3, nin, cout2), jnp.float32)
    b1 = jnp.full((cout1,), bias, jnp.float32)              # bias.zero_().add_(bias)
    b2 = 0.1 * jax.random.normal(k3, (cout2,), jnp.float32)
    return dict(w1=w1, b1=b1, w2=w2, b2=b2)


def _reference_conv(x_nchw, w_taps, bias, compute_dtype):
    """Pure-JAX reference (lax.conv) with operands quantized like the kernel."""
    xq = x_nchw.astype(compute_dtype).astype(jnp.float32)
    wq = w_taps.astype(compute_dtype).astype(jnp.float32)
    w_oihw = jnp.transpose(wq, (3, 2, 0, 1))                # (Cout,Cin,3,3)
    y = lax.conv_general_dilated(
        xq, w_oihw, window_strides=(1, 1), padding="SAME",
        dimension_numbers=("NCHW", "OIHW", "NCHW"))
    return y + bias[None, :, None, None]


def _run_case(name, key, N, H, W, nin, num_classes, k, bias_val):
    pkey, xkey = jax.random.split(key)
    params = init_outconv_params(pkey, k, nin, num_classes, bias_val)
    x = jax.random.normal(xkey, (N, nin, H, W), jnp.float32)

    fused, (c1, c2) = prepare_fused_params(params)          # one-time prep
    out1, out2 = outconv_forward(fused, x, k=k, c1=c1, c2=c2)
    jax.block_until_ready(out1)
    jax.block_until_ready(out2)

    ref1 = _reference_conv(x, params["w1"], params["b1"], jnp.bfloat16)
    ref2 = _reference_conv(x, params["w2"], params["b2"], jnp.bfloat16)
    ref1 = jnp.transpose(ref1, (0, 2, 3, 1)).reshape(N, H * W * k, -1)
    ref2 = jnp.transpose(ref2, (0, 2, 3, 1)).reshape(N, H * W * k, -1)

    assert out1.shape == (N, H * W * k, num_classes), name
    assert out2.shape == (N, H * W * k, 4), name
    assert jnp.allclose(out1, ref1, atol=2e-3, rtol=2e-3), name
    assert jnp.allclose(out2, ref2, atol=2e-3, rtol=2e-3), name


if __name__ == "__main__":
    root = jax.random.PRNGKey(0)
    key_small, key_large = jax.random.split(root)

    # Tiny-Cin path (single wide-K im2col dot), matches the original test shape.
    _run_case("im2col_small_cin", key_small,
              N=2, H=16, W=16, nin=4, num_classes=3, k=2, bias_val=-4.0)

    # Large-Cin path (9 per-tap accumulating dots) — the realistic SSD regime.
    _run_case("per_tap_large_cin", key_large,
              N=1, H=8, W=8, nin=64, num_classes=3, k=2, bias_val=-4.0)

    print("KERNEL_OK")
</pallas_src>

<mosaic_0001>
module attributes {stable_mosaic.version = 11 : i64} {
  func.func @_fused_conv3x3_kernel(%arg0: i32, %arg1: memref<1x16x16x4xf32, #tpu.memory_space<vmem>>, %arg2: memref<36x128xbf16, #tpu.memory_space<vmem>>, %arg3: memref<1x128xf32, #tpu.memory_space<vmem>>, %arg4: memref<1x256x128xf32, #tpu.memory_space<vmem>>) attributes {dimension_semantics = [#tpu.dimension_semantics<parallel>], iteration_bounds = array<i64: 2>, scalar_prefetch = 0 : i64, scratch_operands = 0 : i64, tpu.core_type = #tpu.core_type<tc>, window_params = [{transform_indices = @transform_0, window_bounds = array<i64: 1, 16, 16, 4>}, {pipeline_mode = #tpu.pipeline_mode<synchronous>, transform_indices = @transform_1, window_bounds = array<i64: 36, 128>}, {pipeline_mode = #tpu.pipeline_mode<synchronous>, transform_indices = @transform_2, window_bounds = array<i64: 1, 128>}, {transform_indices = @transform_3, window_bounds = array<i64: 1, 256, 128>}]} {
    %c0 = arith.constant 0 : index
    %c0_0 = arith.constant 0 : index
    %c0_1 = arith.constant 0 : index
    %c0_2 = arith.constant 0 : index
    %0 = vector.load %arg1[%c0, %c0_0, %c0_1, %c0_2] : memref<1x16x16x4xf32, #tpu.memory_space<vmem>>, vector<1x16x16x4xf32>
    %1 = vector.shape_cast %0 : vector<1x16x16x4xf32> to vector<16x16x4xf32>
    %cst = arith.constant 0.000000e+00 : f32
    %2 = vector.broadcast %cst : f32 to vector<1x16x4xf32>
    %3 = tpu.concatenate %2, %1, %2 in 0 : vector<1x16x4xf32>, vector<16x16x4xf32>, vector<1x16x4xf32> -> vector<18x16x4xf32>
    %cst_3 = arith.constant 0.000000e+00 : f32
    %4 = vector.broadcast %cst_3 : f32 to vector<18x1x4xf32>
    %5 = tpu.concatenate %4, %3, %4 in 1 : vector<18x1x4xf32>, vector<18x16x4xf32>, vector<18x1x4xf32> -> vector<18x18x4xf32>
    %6 = vector.extract_strided_slice %5 {offsets = [0, 0, 0], sizes = [16, 16, 4], strides = [1, 1, 1]} : vector<18x18x4xf32> to vector<16x16x4xf32>
    %7 = vector.extract_strided_slice %5 {offsets = [0, 1, 0], sizes = [16, 16, 4], strides = [1, 1, 1]} : vector<18x18x4xf32> to vector<16x16x4xf32>
    %8 = vector.extract_strided_slice %5 {offsets = [0, 2, 0], sizes = [16, 16, 4], strides = [1, 1, 1]} : vector<18x18x4xf32> to vector<16x16x4xf32>
    %9 = vector.extract_strided_slice %5 {offsets = [1, 0, 0], sizes = [16, 16, 4], strides = [1, 1, 1]} : vector<18x18x4xf32> to vector<16x16x4xf32>
    %10 = vector.extract_strided_slice %5 {offsets = [1, 1, 0], sizes = [16, 16, 4], strides = [1, 1, 1]} : vector<18x18x4xf32> to vector<16x16x4xf32>
    %11 = vector.extract_strided_slice %5 {offsets = [1, 2, 0], sizes = [16, 16, 4], strides = [1, 1, 1]} : vector<18x18x4xf32> to vector<16x16x4xf32>
    %12 = vector.extract_strided_slice %5 {offsets = [2, 0, 0], sizes = [16, 16, 4], strides = [1, 1, 1]} : vector<18x18x4xf32> to vector<16x16x4xf32>
    %13 = vector.extract_strided_slice %5 {offsets = [2, 1, 0], sizes = [16, 16, 4], strides = [1, 1, 1]} : vector<18x18x4xf32> to vector<16x16x4xf32>
    %14 = vector.extract_strided_slice %5 {offsets = [2, 2, 0], sizes = [16, 16, 4], strides = [1, 1, 1]} : vector<18x18x4xf32> to vector<16x16x4xf32>
    %15 = tpu.concatenate %6, %7, %8, %9, %10, %11, %12, %13, %14 in 2 : vector<16x16x4xf32>, vector<16x16x4xf32>, vector<16x16x4xf32>, vector<16x16x4xf32>, vector<16x16x4xf32>, vector<16x16x4xf32>, vector<16x16x4xf32>, vector<16x16x4xf32>, vector<16x16x4xf32> -> vector<16x16x36xf32>
    %16 = vector.shape_cast %15 : vector<16x16x36xf32> to vector<256x36xf32>
    %17 = arith.truncf %16 : vector<256x36xf32> to vector<256x36xbf16>
    %c0_4 = arith.constant 0 : index
    %c0_5 = arith.constant 0 : index
    %18 = vector.load %arg2[%c0_4, %c0_5] : memref<36x128xbf16, #tpu.memory_space<vmem>>, vector<36x128xbf16>
    %cst_6 = arith.constant dense<0.000000e+00> : vector<256x128xf32>
    %19 = tpu.matmul %17, %18, %cst_6 {dimension_numbers = #tpu.dot_dimension_numbers<[1], [0], [0], [1], [0, 0, 1, 1], [], []>} : vector<256x36xbf16>, vector<36x128xbf16>, vector<256x128xf32> -> vector<256x128xf32>
    %c0_7 = arith.constant 0 : index
    %c0_8 = arith.constant 0 : index
    %20 = vector.load %arg3[%c0_7, %c0_8] : memref<1x128xf32, #tpu.memory_space<vmem>>, vector<1x128xf32>
    %21 = vector.broadcast %20 : vector<1x128xf32> to vector<256x128xf32>
    %22 = arith.addf %19, %21 : vector<256x128xf32>
    %c0_9 = arith.constant 0 : index
    %c0_10 = arith.constant 0 : index
    %c0_11 = arith.constant 0 : index
    %23 = vector.load %arg4[%c0_9, %c0_10, %c0_11] : memref<1x256x128xf32, #tpu.memory_space<vmem>>, vector<1x256x128xf32>
    %24 = vector.shape_cast %23 : vector<1x256x128xf32> to vector<256x128xf32>
    %25 = vector.shape_cast %22 : vector<256x128xf32> to vector<1x256x128xf32>
    tpu.vector_store %arg4[%c0_9, %c0_10, %c0_11], %25 {strides = array<i32>} : memref<1x256x128xf32, #tpu.memory_space<vmem>>, vector<1x256x128xf32>,
    return
  }
  func.func @transform_0(%arg0: i32) -> (i32, i32, i32, i32) {
    %c0_i32 = arith.constant 0 : i32
    %c0_i32_0 = arith.constant 0 : i32
    %c0_i32_1 = arith.constant 0 : i32
    %c0_i32_2 = arith.constant 0 : i32
    return %arg0, %c0_i32, %c0_i32_0, %c0_i32_1 : i32, i32, i32, i32
  }
  func.func @transform_1(%arg0: i32) -> (i32, i32) {
    %c0_i32 = arith.constant 0 : i32
    %c0_i32_0 = arith.constant 0 : i32
    %c0_i32_1 = arith.constant 0 : i32
    return %c0_i32, %c0_i32_0 : i32, i32
  }
  func.func @transform_2(%arg0: i32) -> (i32, i32) {
    %c0_i32 = arith.constant 0 : i32
    %c0_i32_0 = arith.constant 0 : i32
    %c0_i32_1 = arith.constant 0 : i32
    return %c0_i32, %c0_i32_0 : i32, i32
  }
  func.func @transform_3(%arg0: i32) -> (i32, i32, i32) {
    %c0_i32 = arith.constant 0 : i32
    %c0_i32_0 = arith.constant 0 : i32
    %c0_i32_1 = arith.constant 0 : i32
    return %arg0, %c0_i32, %c0_i32_0 : i32, i32, i32
  }
}

</mosaic_0001>

<bundles_post_ra>
// kernel: outconv_forward.1
= control target key start
LH: loop header
LB: loop body
LE: loop exit
PB: predicated region body
PF: predicated region fallthrough
CT: control target
= control target key end

     0   :  { %s2748_s12 = smov 0   ;;  %s4237_s0 = inlined_call_operand.vmem [shape: f32[2,16,16,4], index: 0, kind: input, shape index: {}]   ;;  %s4238_s1 = inlined_call_operand.vmem [shape: bf16[36,128], index: 1, kind: input, shape index: {}]   ;;  %s4239_s2 = inlined_call_operand.vmem [shape: f32[1,128], index: 2, kind: input, shape index: {}]   ;;  %s4240_s3 = inlined_call_operand.vmem [shape: f32[2,256,128], index: 3, kind: output, shape index: {}]  }
   0x1 LB: > { %s1953_s13 = sadd.s32 4294967295, %s2717_s12   ;;  %p1957_p0 = scmp.ge.s32.totalorder %s2717_s12, 1  ;;  %s2717_s12 = sphi %s2748_s12, %s13_s12  }
   0x2   : > { %p137_p1 = scmp.lt.s32.totalorder %s2717_s12, 3 }
   0x4   : > { %p138_p2 = pnand %p1957_p0, %p137_p1 }
   0x6   : > { %141 = sbr.rel (%p138_p2) target bundleno = 628 (0x274), region = 32 }
   0xd   : > { %vm237_vm0 = vcmask 1040384   ;;  %p161_p3 = scmp.lt.s32.totalorder %s1953_s13, 1  ;;  %v2719_v0 = vmov 0.0   ;;  %vm403_vm1 = vcmask 1046528   ;;  %vm580_vm2 = vcmask 1045504   ;;  %s2720_s18 = smov 4  }
   0xe   : > { %v2756_v1 = vrot.slane %v2719_v0, 7  ;;  %s2721_s19 = smov 8   ;;  %s2722_s20 = smov 12   ;;  %vm1701_vm3 = vcmask 1041408   ;;  %vm1345_vm4 = vcmask 31744   ;;  %vm1378_vm5 = vcmask 64512  }
   0xf   : > { %s4409_s13 = smov (!%p161_p3, %s1953_s13), 1  ;;  %s2723_s21 = smov 16   ;;  %vm1411_vm6 = vcmask 97280   ;;  %vm1444_vm7 = vcmask 130048   ;;  %vm1477_vm8 = vcmask 162816   ;;  %vm1510_vm9 = vcmask 195584  }
  0x10   : > { %4301 = vst [vmem:[#allocation2_spill] sm:$0xff] %v2756_v1  ;;  %v2762_v2 = vsel %vm237_vm0, 0.0, %v2756_v1  ;;  %v354_v3 = vsel %vm237_vm0, %v2756_v1, 0.0  ;;  %v405_v4 = vrot.slane %v2756_v1, 1  ;;  %v582_v5 = vrot.slane %v2756_v1, 2  ;;  %s1984_s14 = sshll.u32 %s4409_s13, 8 }
  0x11   : > { %4302 = vst [vmem:[#allocation3_spill] sm:$0xff] %v2762_v2  ;;  %v404_v6 = vrot.slane %v2762_v2, 1  ;;  %v407_v7 = vrot.slane %v354_v3, 1  ;;  %v584_v8 = vrot.slane %v354_v3, 2  ;;  %v581_v9 = vrot.slane %v2762_v2, 2  ;;  %s2776_s17 = scalar_lea.vmem %s4237_s0, %s1984_s14  ;;  %s2724_s22 = smov 20  }
  0x12   : > { %v174_v12 = vld [vmem:[%s2776_s17 + $0x10] sm:$0xff]  ;;  %v175_v13 = vld [vmem:[%s2776_s17 + $0x18] sm:$0xff]  ;;  %v172_v14 = vld [vmem:[%s2776_s17] sm:$0xff]  ;;  %s2725_s25 = smov 24   ;;  %s2726_s30 = smov 28   ;;  %vm1543_vm10 = vcmask 228352  }
  0x13   : > { %v406_v10 = vsel %vm403_vm1, %v404_v6, %v405_v4  ;;  %v408_v11 = vsel %vm403_vm1, %v405_v4, %v407_v7  ;;  %v2784_v15 = vsel %vm580_vm2, %v581_v9, %v582_v5  ;;  %v2787_v16 = vsel %vm580_vm2, %v582_v5, %v584_v8  ;;  %v173_v20 = vld [vmem:[%s2776_s17 + $0x8] sm:$0xff]  ;;  %v176_v21 = vld [vmem:[%s2776_s17 + $0x20] sm:$0xff]  ;;  %v178_v27 = vld [vmem:[%s2776_s17 + $0x30] sm:$0xff]  ;;  %s2727_s4 = smov 32   ;;  %s4168_s9 = scalar_lea.vmem %s4240_s3, %s1984_s14 }
  0x14   : > { %v2789_v17 = vpack.i.bf16 %v408_v11, %v406_v10  ;;  %v243_v18 = vrot.slane %v174_v12, 7  ;;  %v244_v19 = vrot.slane %v175_v13, 7  ;;  %v177_v22 = vld [vmem:[%s2776_s17 + $0x28] sm:$0xff]  ;;  %v240_v23 = vrot.slane %v172_v14, 7  ;;  %v179_v44 = vld [vmem:[%s2776_s17 + $0x38] sm:$0xff]  ;;  %v180_v45 = vld [vmem:[%s2776_s17 + $0x40] sm:$0xff] }
  0x15   : > { %v241_v24 = vrot.slane %v173_v20, 7  ;;  %v246_v25 = vrot.slane %v176_v21, 7  ;;  %v247_v26 = vrot.slane %v177_v22, 7  ;;  %v249_v31 = vrot.slane %v178_v27, 7  ;;  %v181_v54 = vld [vmem:[%s2776_s17 + $0x48] sm:$0xff]  ;;  %v182_v59 = vld [vmem:[%s2776_s17 + $0x50] sm:$0xff] }
  0x16   : > { %4303 = vst [vmem:[#allocation4_spill] sm:$0xff] %v2789_v17  ;;  %2069 = vrot.lane.b32.xlu0 %v2789_v17, %s2720_s18  ;;  %v2798_v28 = vsel %vm237_vm0, %v243_v18, %v244_v19  ;;  %v2801_v29 = vsel %vm237_vm0, 0.0, %v243_v18  ;;  %v2804_v30 = vsel %vm237_vm0, %v244_v19, 0.0  ;;  %v2814_v37 = vsel %vm237_vm0, 0.0, %v240_v23  ;;  %v183_v0 = vld [vmem:[%s2776_s17 + $0x58] sm:$0xff]  ;;  %v184_v22 = vld [vmem:[%s2776_s17 + $0x60] sm:$0xff] }
  0x17   : > { %4304 = vst [vmem:[#allocation5_spill] sm:$0xff] %v2798_v28  ;;  %v414_v32 = vrot.slane %v2801_v29, 1  ;;  %v415_v33 = vrot.slane %v2798_v28, 1  ;;  %v417_v34 = vrot.slane %v2804_v30, 1  ;;  %v2811_v36 = vsel %vm237_vm0, %v240_v23, %v241_v24  ;;  %4306 = vst [vmem:[#allocation7_spill] sm:$0xff] %v2814_v37  ;;  %v185_v23 = vld [vmem:[%s2776_s17 + $0x68] sm:$0xff] }
  0x18   : > { %4305 = vst [vmem:[#allocation6_spill] sm:$0xff] %v2811_v36  ;;  %v2817_v38 = vsel %vm237_vm0, %v241_v24, 0.0  ;;  %v2820_v39 = vsel %vm237_vm0, %v246_v25, %v247_v26  ;;  %v409_v42 = vrot.slane %v2814_v37, 1  ;;  %v410_v43 = vrot.slane %v2811_v36, 1  ;;  %v198_v17 = vld [vmem:[%s2776_s17 + $0xd0] sm:$0xff] }
  0x19   : > { %4307 = vst [vmem:[#allocation8_spill] sm:$0xff] %v2820_v39  ;;  %v416_v40 = vsel %vm403_vm1, %v414_v32, %v415_v33  ;;  %v418_v41 = vsel %vm403_vm1, %v415_v33, %v417_v34  ;;  %v412_v47 = vrot.slane %v2817_v38, 1  ;;  %v2832_v48 = vsel %vm237_vm0, 0.0, %v246_v25  ;;  %v187_v32 = vld [vmem:[%s2776_s17 + $0x78] sm:$0xff]  ;;  %v188_v33 = vld [vmem:[%s2776_s17 + $0x80] sm:$0xff] }
  0x1a   : > { %v2828_v46 = vpack.i.bf16 %v418_v41, %v416_v40  ;;  %4309 = vst [vmem:[#allocation10_spill] sm:$0xff] %v2832_v48  ;;  %v2835_v49 = vsel %vm237_vm0, %v247_v26, 0.0  ;;  %v411_v50 = vsel %vm403_vm1, %v409_v42, %v410_v43  ;;  %v419_v51 = vrot.slane %v2832_v48, 1 }
  0x1b   : > { %v420_v52 = vrot.slane %v2820_v39, 1  ;;  %v422_v53 = vrot.slane %v2835_v49, 1  ;;  %v413_v55 = vsel %vm403_vm1, %v410_v43, %v412_v47  ;;  %v250_v56 = vrot.slane %v179_v44, 7 }
  0x1c   : > { %4308 = vst [vmem:[#allocation9_spill] sm:$0xff] %v2828_v46  ;;  %2079 = vrot.lane.b32.xlu1 %v2828_v46, %s2720_s18  ;;  %v2846_v57 = vsel %vm237_vm0, 0.0, %v249_v31  ;;  %v252_v58 = vrot.slane %v180_v45, 7  ;;  %v2849_v60 = vpack.i.bf16 %v413_v55, %v411_v50  ;;  %v253_v6 = vrot.slane %v181_v54, 7 }
  0x1d   : > { %v421_v61 = vsel %vm403_vm1, %v419_v51, %v420_v52  ;;  %v423_v62 = vsel %vm403_vm1, %v420_v52, %v422_v53  ;;  %v424_v63 = vrot.slane %v2846_v57, 1  ;;  %v2858_v4 = vsel %vm237_vm0, %v249_v31, %v250_v56  ;;  %v186_v31 = vld [vmem:[%s2776_s17 + $0x70] sm:$0xff]  ;;  %v189_v53 = vld [vmem:[%s2776_s17 + $0x88] sm:$0xff] }
  0x1e   : > { %4310 = vst [vmem:[#allocation11_spill] sm:$0xff] %v2849_v60  ;;  %v2855_v3 = vpack.i.bf16 %v423_v62, %v421_v61  ;;  %v2861_v5 = vsel %vm237_vm0, %v250_v56, 0.0  ;;  %2074 = vrot.lane.b32.xlu0 %v2849_v60, %s2720_s18  ;;  %v425_v7 = vrot.slane %v2858_v4, 1  ;;  %v2868_v9 = vsel %vm237_vm0, 0.0, %v252_v58 }
  0x1f   : > { %v427_v8 = vrot.slane %v2861_v5, 1  ;;  %v255_v10 = vrot.slane %v182_v59, 7  ;;  %v2873_v11 = vsel %vm237_vm0, %v252_v58, %v253_v6  ;;  %v2876_v12 = vsel %vm237_vm0, %v253_v6, 0.0 }
  0x20   : > { %4311 = vst [vmem:[#allocation12_spill] sm:$0xff] %v2855_v3  ;;  %2084 = vrot.lane.b32.xlu1 %v2855_v3, %s2720_s18  ;;  %v429_v13 = vrot.slane %v2868_v9, 1  ;;  %v256_v14 = vrot.slane %v183_v0, 7  ;;  %v2880_v18 = vsel %vm403_vm1, %v424_v63, %v425_v7  ;;  %v430_v20 = vrot.slane %v2873_v11, 1 }
  0x21   : > { %4312 = vst [vmem:[#allocation13_spill] sm:$0xff] %v2880_v18  ;;  %v2883_v19 = vsel %vm403_vm1, %v425_v7, %v427_v8  ;;  %v432_v21 = vrot.slane %v2876_v12, 1  ;;  %v2897_v26 = vsel %vm237_vm0, 0.0, %v255_v10  ;;  %v258_v45 = vrot.slane %v184_v22, 7  ;;  %v190_v22 = vld [vmem:[%s2776_s17 + $0x90] sm:$0xff] }
  0x22   : > { %4313 = vst [vmem:[#allocation14_spill] sm:$0xff] %v2883_v19  ;;  %v2891_v24 = vpack.i.bf16 %v2883_v19, %v2880_v18  ;;  %v2894_v25 = vsel %vm237_vm0, %v255_v10, %v256_v14  ;;  %v2900_v27 = vsel %vm237_vm0, %v256_v14, 0.0  ;;  %v431_v34 = vsel %vm403_vm1, %v429_v13, %v430_v20 }
  0x23   : > { %v433_v40 = vsel %vm403_vm1, %v430_v20, %v432_v21  ;;  %v434_v41 = vrot.slane %v2897_v26, 1  ;;  %v435_v42 = vrot.slane %v2894_v25, 1  ;;  %v437_v44 = vrot.slane %v2900_v27, 1 }
  0x24   : > { %4314 = vst [vmem:[#allocation15_spill] sm:$0xff] %v2891_v24  ;;  %2089 = vrot.lane.b32.xlu0 %v2891_v24, %s2720_s18  ;;  %v2911_v43 = vpack.i.bf16 %v433_v40, %v431_v34  ;;  %v259_v47 = vrot.slane %v185_v23, 7  ;;  %v261_v51 = vrot.slane %v186_v31, 7  ;;  %v262_v52 = vrot.slane %v187_v32, 7  ;;  %v191_v23 = vld [vmem:[%s2776_s17 + $0x98] sm:$0xff]  ;;  %v192_v40 = vld [vmem:[%s2776_s17 + $0xa0] sm:$0xff] }
  0x25   : > { %v436_v50 = vsel %vm403_vm1, %v434_v41, %v435_v42  ;;  %v264_v54 = vrot.slane %v188_v33, 7  ;;  %v438_v55 = vsel %vm403_vm1, %v435_v42, %v437_v44  ;;  %v2923_v58 = vsel %vm237_vm0, 0.0, %v258_v45  ;;  %v193_v41 = vld [vmem:[%s2776_s17 + $0xa8] sm:$0xff] }
  0x26   : > { %4315 = vst [vmem:[#allocation16_spill] sm:$0xff] %v2911_v43  ;;  %2094 = vrot.lane.b32.xlu1 %v2911_v43, %s2720_s18  ;;  %v2920_v56 = vsel %vm237_vm0, %v258_v45, %v259_v47  ;;  %v2926_v59 = vsel %vm237_vm0, %v259_v47, 0.0  ;;  %v2928_v61 = vpack.i.bf16 %v438_v55, %v436_v50  ;;  %v439_v62 = vrot.slane %v2923_v58, 1 }
  0x27   : > { %v440_v63 = vrot.slane %v2920_v56, 1  ;;  %v442_v0 = vrot.slane %v2926_v59, 1  ;;  %v2934_v6 = vsel %vm237_vm0, %v261_v51, %v262_v52  ;;  %v2937_v7 = vsel %vm237_vm0, 0.0, %v261_v51 }
  0x28   : > { %4316 = vst [vmem:[#allocation17_spill] sm:$0xff] %v2928_v61  ;;  %4317 = vst [vmem:[#allocation18_spill] sm:$0xff] %v2934_v6  ;;  %v2940_v8 = vsel %vm237_vm0, %v262_v52, 0.0  ;;  %v265_v10 = vrot.slane %v189_v53, 7  ;;  %2099 = vrot.lane.b32.xlu0 %v2928_v61, %s2720_s18  ;;  %v444_v20 = vrot.slane %v2937_v7, 1  ;;  %v445_v21 = vrot.slane %v2934_v6, 1 }
  0x29   : > { %4318 = vst [vmem:[#allocation19_spill] sm:$0xff] %v2937_v7  ;;  %v441_v13 = vsel %vm403_vm1, %v439_v62, %v440_v63  ;;  %v443_v14 = vsel %vm403_vm1, %v440_v63, %v442_v0  ;;  %v447_v32 = vrot.slane %v2940_v8, 1  ;;  %v2957_v34 = vsel %vm237_vm0, 0.0, %v264_v54  ;;  %v194_v0 = vld [vmem:[%s2776_s17 + $0xb0] sm:$0xff] }
  0x2a   : > { %v2950_v31 = vpack.i.bf16 %v443_v14, %v441_v13  ;;  %v2954_v33 = vsel %vm237_vm0, %v264_v54, %v265_v10  ;;  %4321 = vst [vmem:[#allocation22_spill] sm:$0xff] %v2957_v34  ;;  %v446_v42 = vsel %vm403_vm1, %v444_v20, %v445_v21  ;;  %v2963_v44 = vsel %vm237_vm0, %v265_v10, 0.0 }
  0x2b   : > { %4320 = vst [vmem:[#allocation21_spill] sm:$0xff] %v2954_v33  ;;  %v449_v45 = vrot.slane %v2957_v34, 1  ;;  %v450_v47 = vrot.slane %v2954_v33, 1  ;;  %v448_v50 = vsel %vm403_vm1, %v445_v21, %v447_v32  ;;  %v452_v51 = vrot.slane %v2963_v44, 1 }
  0x2c   : > { %4319 = vst [vmem:[#allocation20_spill] sm:$0xff] %v2950_v31  ;;  %2104 = vrot.lane.b32.xlu1 %v2950_v31, %s2720_s18  ;;  %v267_v52 = vrot.slane %v190_v22, 7  ;;  %v268_v53 = vrot.slane %v191_v23, 7  ;;  %v2971_v54 = vpack.i.bf16 %v448_v50, %v446_v42  ;;  %v270_v62 = vrot.slane %v192_v40, 7  ;;  %v195_v40 = vld [vmem:[%s2776_s17 + $0xb8] sm:$0xff]  ;;  %v196_v50 = vld [vmem:[%s2776_s17 + $0xc0] sm:$0xff] }
  0x2d   : > { %v2974_v55 = vsel %vm403_vm1, %v449_v45, %v450_v47  ;;  %v271_v63 = vrot.slane %v193_v41, 7  ;;  %v2978_v10 = vsel %vm403_vm1, %v450_v47, %v452_v51  ;;  %v273_v47 = vrot.slane %v194_v0, 7  ;;  %v197_v51 = vld [vmem:[%s2776_s17 + $0xc8] sm:$0xff] }
  0x2e   : > { %4322 = vst [vmem:[#allocation23_spill] sm:$0xff] %v2971_v54  ;;  %4323 = vst [vmem:[#allocation24_spill] sm:$0xff] %v2974_v55  ;;  %v2981_v13 = vsel %vm237_vm0, %v267_v52, %v268_v53  ;;  %v2984_v14 = vsel %vm237_vm0, 0.0, %v267_v52  ;;  %v2987_v20 = vsel %vm237_vm0, %v268_v53, 0.0  ;;  %2109 = vrot.lane.b32.xlu0 %v2971_v54, %s2720_s18  ;;  %v2993_v21 = vpack.i.bf16 %v2978_v10, %v2974_v55  ;;  %v199_v54 = vld [vmem:[%s2776_s17 + $0xd8] sm:$0xff] }
  0x2f   : > { %4324 = vst [vmem:[#allocation25_spill] sm:$0xff] %v2978_v10  ;;  %4325 = vst [vmem:[#allocation26_spill] sm:$0xff] %v2981_v13  ;;  %v454_v22 = vrot.slane %v2984_v14, 1  ;;  %v455_v23 = vrot.slane %v2981_v13, 1  ;;  %v457_v32 = vrot.slane %v2987_v20, 1  ;;  %v3000_v41 = vsel %vm237_vm0, %v270_v62, %v271_v63 }
  0x30   : > { %4326 = vst [vmem:[#allocation27_spill] sm:$0xff] %v2984_v14  ;;  %4327 = vst [vmem:[#allocation28_spill] sm:$0xff] %v2993_v21  ;;  %v3003_v42 = vsel %vm237_vm0, 0.0, %v270_v62  ;;  %v3006_v45 = vsel %vm237_vm0, %v271_v63, 0.0  ;;  %2114 = vrot.lane.b32.xlu1 %v2993_v21, %s2720_s18  ;;  %v460_v62 = vrot.slane %v3000_v41, 1  ;;  %v274_v2 = vrot.slane %v195_v40, 7 }
  0x31   : > { %4328 = vst [vmem:[#allocation29_spill] sm:$0xff] %v3000_v41  ;;  %4329 = vst [vmem:[#allocation30_spill] sm:$0xff] %v3003_v42  ;;  %v3013_v52 = vsel %vm403_vm1, %v454_v22, %v455_v23  ;;  %v3016_v53 = vsel %vm403_vm1, %v455_v23, %v457_v32  ;;  %v459_v35 = vrot.slane %v3003_v42, 1  ;;  %v462_v0 = vrot.slane %v3006_v45, 1 }
  0x32   : > { %4330 = vst [vmem:[#allocation31_spill] sm:$0xff] %v3013_v52  ;;  %v3023_v63 = vpack.i.bf16 %v3016_v53, %v3013_v52  ;;  %v3027_v21 = vsel %vm237_vm0, 0.0, %v273_v47  ;;  %v276_v32 = vrot.slane %v196_v50, 7  ;;  %v277_v1 = vrot.slane %v197_v51, 7  ;;  %v200_v52 = vld [vmem:[%s2776_s17 + $0xe0] sm:$0xff] }
  0x33   : > { %v3030_v22 = vsel %vm403_vm1, %v459_v35, %v460_v62  ;;  %v464_v23 = vrot.slane %v3027_v21, 1  ;;  %v3037_v31 = vsel %vm403_vm1, %v460_v62, %v462_v0  ;;  %v3040_v61 = vsel %vm237_vm0, %v273_v47, %v274_v2 }
  0x34   : > { %4331 = vst [vmem:[#allocation32_spill] sm:$0xff] %v3023_v63  ;;  %2119 = vrot.lane.b32.xlu0 %v3023_v63, %s2720_s18  ;;  %4332 = vst [vmem:[#allocation33_spill] sm:$0xff] %v3037_v31  ;;  %v3043_v40 = vsel %vm237_vm0, %v274_v2, 0.0  ;;  %v279_v35 = vrot.slane %v198_v17, 7  ;;  %v3047_v50 = vpack.i.bf16 %v3037_v31, %v3030_v22  ;;  %v465_v51 = vrot.slane %v3040_v61, 1 }
  0x35   : > { %v467_v43 = vrot.slane %v3043_v40, 1  ;;  %v3052_v62 = vsel %vm237_vm0, %v276_v32, %v277_v1  ;;  %v3055_v47 = vsel %vm237_vm0, 0.0, %v276_v32  ;;  %v3058_v0 = vsel %vm237_vm0, %v277_v1, 0.0  ;;  %v201_v32 = vld [vmem:[%s2776_s17 + $0xe8] sm:$0xff] }
  0x36   : > { %4333 = vst [vmem:[#allocation34_spill] sm:$0xff] %v3047_v50  ;;  %v470_v2 = vrot.slane %v3052_v62, 1  ;;  %v280_v17 = vrot.slane %v199_v54, 7  ;;  %2124 = vrot.lane.b32.xlu1 %v3047_v50, %s2720_s18  ;;  %v466_v24 = vsel %vm403_vm1, %v464_v23, %v465_v51  ;;  %v469_v31 = vrot.slane %v3055_v47, 1 }
  0x37   : > { %v468_v19 = vsel %vm403_vm1, %v465_v51, %v467_v43  ;;  %v472_v63 = vrot.slane %v3058_v0, 1  ;;  %v3075_v54 = vsel %vm237_vm0, 0.0, %v279_v35  ;;  %v283_v55 = vrot.slane %v201_v32, 7 }
  0x38   : > { %v3069_v10 = vpack.i.bf16 %v468_v19, %v466_v24  ;;  %v3072_v1 = vsel %vm237_vm0, %v279_v35, %v280_v17  ;;  %v3078_v50 = vsel %vm237_vm0, %v280_v17, 0.0  ;;  %v471_v23 = vsel %vm403_vm1, %v469_v31, %v470_v2 }
  0x39   : > { %v473_v43 = vsel %vm403_vm1, %v470_v2, %v472_v63  ;;  %v474_v51 = vrot.slane %v3075_v54, 1  ;;  %v475_v3 = vrot.slane %v3072_v1, 1  ;;  %v477_v24 = vrot.slane %v3078_v50, 1 }
  0x3a   : > { %4334 = vst [vmem:[#allocation35_spill] sm:$0xff] %v3069_v10  ;;  %2129 = vrot.lane.b32.xlu0 %v3069_v10, %s2720_s18  ;;  %v3086_v19 = vpack.i.bf16 %v473_v43, %v471_v23  ;;  %v282_v35 = vrot.slane %v200_v52, 7  ;;  %v3092_v31 = vpack.i.bf16 %v2787_v16, %v2784_v15  ;;  %v586_v63 = vrot.slane %v2814_v37, 2 }
  0x3b   : > { %v476_v17 = vsel %vm403_vm1, %v474_v51, %v475_v3  ;;  %v478_v2 = vsel %vm403_vm1, %v475_v3, %v477_v24  ;;  %v3105_v52 = vsel %vm237_vm0, %v283_v55, 0.0  ;;  %v589_v3 = vrot.slane %v2817_v38, 2 }
  0x3c   : > { %4335 = vst [vmem:[#allocation36_spill] sm:$0xff] %v3086_v19  ;;  %4336 = vst [vmem:[#allocation37_spill] sm:$0xff] %v3092_v31  ;;  %2134 = vrot.lane.b32.xlu1 %v3086_v19, %s2720_s18  ;;  %v3099_v23 = vsel %vm237_vm0, %v282_v35, %v283_v55  ;;  %v3102_v43 = vsel %vm237_vm0, 0.0, %v282_v35  ;;  %v3107_v32 = vpack.i.bf16 %v478_v2, %v476_v17  ;;  %v482_v51 = vrot.slane %v3105_v52, 1 }
  0x3d   : > { %v479_v15 = vrot.slane %v3102_v43, 1  ;;  %v480_v16 = vrot.slane %v3099_v23, 1  ;;  %v587_v19 = vrot.slane %v2811_v36, 2  ;;  %v591_v24 = vrot.slane %v2801_v29, 2 }
  0x3e   : > { %4337 = vst [vmem:[#allocation38_spill] sm:$0xff] %v3107_v32  ;;  %v592_v35 = vrot.slane %v2798_v28, 2  ;;  %2139 = vrot.lane.b32.xlu0 %v3107_v32, %s2720_s18  ;;  %v596_v2 = vrot.slane %v2832_v48, 2  ;;  %v597_v10 = vrot.slane %v2820_v39, 2  ;;  %v4338_v32 = vrot.slane %v2804_v30, 2 }
  0x3f   : > { %v481_v55 = vsel %vm403_vm1, %v479_v15, %v480_v16  ;;  %v483_v17 = vsel %vm403_vm1, %v480_v16, %v482_v51  ;;  %v588_v46 = vsel %vm580_vm2, %v586_v63, %v587_v19  ;;  %v590_v38 = vsel %vm580_vm2, %v587_v19, %v589_v3 }
  0x40   : > { %v3122_v18 = vpack.i.bf16 %v483_v17, %v481_v55  ;;  %v593_v60 = vsel %vm580_vm2, %v591_v24, %v592_v35  ;;  %v3127_v28 = vpack.i.bf16 %v590_v38, %v588_v46  ;;  %v595_v15 = vsel %vm580_vm2, %v592_v35, %v4338_v32 }
  0x41   : > { %v598_v16 = vsel %vm580_vm2, %v596_v2, %v597_v10  ;;  %v599_v51 = vrot.slane %v2835_v49, 2  ;;  %v3136_v55 = vpack.i.bf16 %v595_v15, %v593_v60  ;;  %v601_v63 = vrot.slane %v2846_v57, 2 }
  0x42   : > { %2144 = vrot.lane.b32.xlu1 %v3122_v18, %s2720_s18  ;;  %v602_v19 = vrot.slane %v2858_v4, 2  ;;  %v604_v46 = vrot.slane %v2861_v5, 2  ;;  %2149 = vrot.lane.b32.xlu0 %v3092_v31, %s2721_s19  ;;  %v606_v32 = vrot.slane %v2868_v9, 2  ;;  %v607_v49 = vrot.slane %v2873_v11, 2 }
  0x43   : > { %v600_v30 = vsel %vm580_vm2, %v597_v10, %v599_v51  ;;  %v609_v3 = vrot.slane %v2876_v12, 2  ;;  %v611_v35 = vrot.slane %v2897_v26, 2  ;;  %v612_v2 = vrot.slane %v2894_v25, 2 }
  0x44   : > { %v603_v60 = vsel %vm580_vm2, %v601_v63, %v602_v19  ;;  %v605_v24 = vsel %vm580_vm2, %v602_v19, %v604_v46  ;;  %v3150_v17 = vpack.i.bf16 %v600_v30, %v598_v16  ;;  %v608_v5 = vsel %vm580_vm2, %v606_v32, %v607_v49 }
  0x45   : > { %v610_v10 = vsel %vm580_vm2, %v607_v49, %v609_v3  ;;  %v614_v38 = vrot.slane %v2900_v27, 2  ;;  %v616_v12 = vrot.slane %v2923_v58, 2  ;;  %v617_v15 = vrot.slane %v2920_v56, 2 }
  0x46   : > { %2154 = vrot.lane.b32.xlu1 %v3127_v28, %s2721_s19  ;;  %2159 = vrot.lane.b32.xlu0 %v3136_v55, %s2721_s19  ;;  %v3162_v16 = vpack.i.bf16 %v605_v24, %v603_v60  ;;  %v619_v51 = vrot.slane %v2926_v59, 2  ;;  %v621_v63 = vrot.slane %v2937_v7, 2  ;;  %v622_v19 = vrot.slane %v2934_v6, 2 }
  0x47   : > { %v613_v46 = vsel %vm580_vm2, %v611_v35, %v612_v2  ;;  %v615_v30 = vsel %vm580_vm2, %v612_v2, %v614_v38  ;;  %v624_v27 = vrot.slane %v2940_v8, 2  ;;  %v3170_v32 = vpack.i.bf16 %v610_v10, %v608_v5 }
  0x48   : > { %v618_v49 = vsel %vm580_vm2, %v616_v12, %v617_v15  ;;  %v626_v3 = vrot.slane %v2957_v34, 2  ;;  %v627_v60 = vrot.slane %v2954_v33, 2  ;;  %v620_v59 = vsel %vm580_vm2, %v617_v15, %v619_v51 }
  0x49   : > { %v623_v24 = vsel %vm580_vm2, %v621_v63, %v622_v19  ;;  %v625_v35 = vsel %vm580_vm2, %v622_v19, %v624_v27  ;;  %v629_v2 = vrot.slane %v2963_v44, 2  ;;  %v3183_v8 = vpack.i.bf16 %v615_v30, %v613_v46 }
  0x4a   : > { %2164 = vrot.lane.b32.xlu1 %v3150_v17, %s2721_s19  ;;  %2169 = vrot.lane.b32.xlu0 %v3162_v16, %s2721_s19  ;;  %v631_v5 = vrot.slane %v2984_v14, 2  ;;  %v632_v10 = vrot.slane %v2981_v13, 2  ;;  %v634_v38 = vrot.slane %v2987_v20, 2  ;;  %v3188_v12 = vpack.i.bf16 %v620_v59, %v618_v49 }
  0x4b   : > { %v3190_v15 = vpack.i.bf16 %v625_v35, %v623_v24  ;;  %v628_v51 = vsel %vm580_vm2, %v626_v3, %v627_v60  ;;  %v630_v44 = vsel %vm580_vm2, %v627_v60, %v629_v2  ;;  %v636_v63 = vrot.slane %v3003_v42, 2 }
  0x4c   : > { %v637_v19 = vrot.slane %v3000_v41, 2  ;;  %v639_v46 = vrot.slane %v3006_v45, 2  ;;  %v633_v20 = vsel %vm580_vm2, %v631_v5, %v632_v10  ;;  %v635_v30 = vsel %vm580_vm2, %v632_v10, %v634_v38 }
  0x4d   : > { %4339 = vst [vmem:[#allocation39_spill] sm:$0xff] %v3190_v15  ;;  %v641_v27 = vrot.slane %v3027_v21, 2  ;;  %v642_v49 = vrot.slane %v3040_v61, 2  ;;  %v644_v3 = vrot.slane %v3043_v40, 2  ;;  %v3208_v60 = vpack.i.bf16 %v630_v44, %v628_v51 }
  0x4e   : > { %2174 = vrot.lane.b32.xlu1 %v3170_v32, %s2721_s19  ;;  %2179 = vrot.lane.b32.xlu0 %v3183_v8, %s2721_s19  ;;  %v3210_v59 = vpack.i.bf16 %v635_v30, %v633_v20  ;;  %v646_v45 = vrot.slane %v3055_v47, 2  ;;  %v647_v24 = vrot.slane %v3052_v62, 2  ;;  %v638_v35 = vsel %vm580_vm2, %v636_v63, %v637_v19 }
  0x4f   : > { %4340 = vst [vmem:[#allocation40_spill] sm:$0xff] %v3208_v60  ;;  %v640_v2 = vsel %vm580_vm2, %v637_v19, %v639_v46  ;;  %v643_v40 = vsel %vm580_vm2, %v641_v27, %v642_v49  ;;  %v649_v5 = vrot.slane %v3058_v0, 2  ;;  %v645_v10 = vsel %vm580_vm2, %v642_v49, %v644_v3 }
  0x50   : > { %v651_v38 = vrot.slane %v3075_v54, 2  ;;  %v652_v51 = vrot.slane %v3072_v1, 2  ;;  %v654_v44 = vrot.slane %v3078_v50, 2  ;;  %v3226_v20 = vpack.i.bf16 %v640_v2, %v638_v35 }
  0x51   : > { %v648_v63 = vsel %vm580_vm2, %v646_v45, %v647_v24  ;;  %v656_v19 = vrot.slane %v3102_v43, 2  ;;  %v3232_v0 = vpack.i.bf16 %v645_v10, %v643_v40  ;;  %v650_v46 = vsel %vm580_vm2, %v647_v24, %v649_v5  ;;  %v4341_v5 = vld [vmem:[#allocation5_spill] sm:$0xff] }
  0x52   : > { %2184 = vrot.lane.b32.xlu1 %v3188_v12, %s2721_s19  ;;  %2189 = vrot.lane.b32.xlu0 %v3190_v15, %s2721_s19  ;;  %v657_v30 = vrot.slane %v3099_v23, 2  ;;  %v659_v50 = vrot.slane %v3105_v52, 2  ;;  %v653_v27 = vsel %vm580_vm2, %v651_v38, %v652_v51  ;;  %v655_v49 = vsel %vm580_vm2, %v652_v51, %v654_v44 }
  0x53   : > { %v3241_v3 = vpack.i.bf16 %v650_v46, %v648_v63  ;;  %v3247_v24 = vpack.i.bf16 %v655_v49, %v653_v27  ;;  %v2228_v40 = vpack.i.bf16 %v2811_v36, %v2814_v37  ;;  %v3263_v10 = vpack.i.bf16 %v4341_v5, %v2801_v29  ;;  %v202_v49 = vld [vmem:[%s2776_s17 + $0xf0] sm:$0xff]  ;;  %v4348_v37 = vld [vmem:[#allocation13_spill] sm:$0xff] }
  0x54   : > { %v658_v35 = vsel %vm580_vm2, %v656_v19, %v657_v30  ;;  %v660_v52 = vsel %vm580_vm2, %v657_v30, %v659_v50  ;;  %v3268_v38 = vpack.i.bf16 %v2820_v39, %v2832_v48  ;;  %v3274_v51 = vpack.i.bf16 %v2858_v4, %v2846_v57  ;;  %v4349_v36 = vld [vmem:[#allocation24_spill] sm:$0xff] }
  0x55   : > { %v3253_v2 = vpack.i.bf16 %v660_v52, %v658_v35  ;;  %v3280_v44 = vpack.i.bf16 %v2873_v11, %v2868_v9  ;;  %v3286_v63 = vpack.i.bf16 %v2894_v25, %v2897_v26  ;;  %v3292_v19 = vpack.i.bf16 %v2920_v56, %v2923_v58  ;;  %v203_v35 = vld [vmem:[%s2776_s17 + $0xf8] sm:$0xff] }
  0x56   : > { %2194 = vrot.lane.b32.xlu1 %v3208_v60, %s2721_s19  ;;  %2199 = vrot.lane.b32.xlu0 %v3210_v59, %s2721_s19  ;;  %v3298_v46 = vpack.i.bf16 %v2934_v6, %v2937_v7  ;;  %v3304_v30 = vpack.i.bf16 %v2954_v33, %v2957_v34  ;;  %v2273_v50 = vpack.i.bf16 %v2981_v13, %v2984_v14  ;;  %v285_v45 = vrot.slane %v202_v49, 7  ;;  %v4347_v6 = vld [vmem:[#allocation9_spill] sm:$0xff] }
  0x57   : > { %v3314_v27 = vpack.i.bf16 %v3000_v41, %v3003_v42  ;;  %v3321_v52 = vpack.i.bf16 %v3040_v61, %v3027_v21  ;;  %v286_v14 = vrot.slane %v203_v35, 7  ;;  %v3333_v42 = vpack.i.bf16 %v3072_v1, %v3075_v54 }
  0x58   : > { %4342 = vst [vmem:[#allocation5_spill] sm:$0xff] %v3298_v46  ;;  %4343 = vst [vmem:[#allocation41_spill] sm:$0xff] %v3304_v30  ;;  %v3339_v41 = vpack.i.bf16 %v3099_v23, %v3102_v43  ;;  %v353_v39 = vsel %vm237_vm0, 0.0, %v285_v45  ;;  %v2323_v48 = vpack.i.bf16 %v4349_v36, %v4348_v37  ;;  %v4354_v36 = vpack.i.bf16 %v3030_v22, %v3016_v53  ;;  %v2709_v53 = vld [vmem:[%s4238_s1 + $0x8] sm:$0xff]  }
  0x59   : > { %v287_v13 = vsel %vm237_vm0, %v285_v45, %v286_v14  ;;  %v855_v49 = vrot.slane %v353_v39, 1  ;;  %v370_v31 = vsel %vm237_vm0, %v286_v14, 0.0  ;;  %v4346_v14 = vld [vmem:[#allocation11_spill] sm:$0xff]  ;;  %v956_v45 = vrot.slane %v353_v39, 2 }
  0x5a   : > { %2204 = vrot.lane.b32.xlu1 %v3226_v20, %s2721_s19  ;;  %2209 = vrot.lane.b32.xlu0 %v3232_v0, %s2721_s19  ;;  %v856_v35 = vrot.slane %v287_v13, 1  ;;  %v957_v7 = vrot.slane %v287_v13, 2  ;;  %vm1576_vm11 = vcmask 261120   ;;  %vm1652_vm12 = vcmask 293888  }
  0x5c   : > { %v857_v15 = vsel %vm403_vm1, %v855_v49, %v856_v35  ;;  %v959_v49 = vrot.slane %v370_v31, 2 }
  0x5e   : > { %2214 = vrot.lane.b32.xlu1 %v3241_v3, %s2721_s19  ;;  %2219 = vrot.lane.b32.xlu0 %v3247_v24, %s2721_s19 }
  0x62   : > { %2224 = vrot.lane.b32.xlu1 %v3253_v2, %s2721_s19  ;;  %2229 = vrot.lane.b32.xlu0 %v2228_v40, %s2722_s20  ;;  %v3327_v40 = vpack.i.bf16 %v3052_v62, %v3055_v47 }
  0x66   : > { %2234 = vrot.lane.b32.xlu1 %v3263_v10, %s2722_s20  ;;  %2239 = vrot.lane.b32.xlu0 %v3268_v38, %s2722_s20 }
  0x6a   : > { %2244 = vrot.lane.b32.xlu1 %v3274_v51, %s2722_s20  ;;  %2249 = vrot.lane.b32.xlu0 %v3280_v44, %s2722_s20 }
  0x6e   : > { %2254 = vrot.lane.b32.xlu1 %v3286_v63, %s2722_s20  ;;  %2259 = vrot.lane.b32.xlu0 %v3292_v19, %s2722_s20 }
  0x72   : > { %2264 = vrot.lane.b32.xlu1 %v3298_v46, %s2722_s20  ;;  %2269 = vrot.lane.b32.xlu0 %v3304_v30, %s2722_s20  ;;  %v3346_v30 = vpack.i.bf16 %v287_v13, %v353_v39  ;;  %v858_v46 = vrot.slane %v370_v31, 1  ;;  %v2710_v31 = vld [vmem:[%s4238_s1 + $0x10] ss:$0 sps:$4 sm:$0x33]  }
  0x74   : > { %4344 = vst [vmem:[#allocation42_spill] sm:$0xff] %v3346_v30  ;;  %v859_v34 = vsel %vm403_vm1, %v856_v35, %v858_v46  ;;  %v4350_v46 = vld [vmem:[#allocation12_spill] sm:$0xff] }
  0x75   : > { %v3352_v33 = vpack.i.bf16 %v859_v34, %v857_v15  ;;  %v4351_v34 = vld [vmem:[#allocation25_spill] sm:$0xff]  ;;  %v4352_v15 = vld [vmem:[#allocation31_spill] sm:$0xff] }
  0x76   : > { %2274 = vrot.lane.b32.xlu1 %v2273_v50, %s2722_s20  ;;  %2279 = vrot.lane.b32.xlu0 %v3314_v27, %s2722_s20  ;;  %v2328_v35 = vpack.i.bf16 %v4352_v15, %v4351_v34  ;;  %v4360_v34 = vld [vmem:[#allocation14_spill] sm:$0xff] }
  0x77   : > { %4345 = vst [vmem:[#allocation43_spill] sm:$0xff] %v3352_v33  ;;  %v960_v33 = vsel %vm580_vm2, %v957_v7, %v959_v49 }
  0x7a   : > { %2284 = vrot.lane.b32.xlu1 %v3321_v52, %s2722_s20  ;;  %2289 = vrot.lane.b32.xlu0 %v3327_v40, %s2722_s20 }
  0x7e   : > { %2294 = vrot.lane.b32.xlu1 %v3333_v42, %s2722_s20  ;;  %2299 = vrot.lane.b32.xlu0 %v3339_v41, %s2722_s20 }
  0x82   : > { %2304 = vrot.lane.b32.xlu1 %v3346_v30, %s2722_s20  ;;  %2309 = vrot.lane.b32.xlu0 %v4346_v14, %s2723_s21  ;;  %v958_v30 = vsel %vm580_vm2, %v956_v45, %v957_v7  ;;  %v4356_v45 = vld [vmem:[#allocation34_spill] sm:$0xff] }
  0x83   : > { %v3368_v14 = vpack.i.bf16 %v960_v33, %v958_v30  ;;  %v2708_v33 = vld [vmem:[%s4238_s1] sm:$0xff]  }
  0x84   : > { %2005 = vmatprep.subr.bf16.mxu0 %v2708_v33  ;;  %2043 = vmatprep.subr.bf16.mxu1 %v2708_v33 }
  0x85   : > { %4353 = vst [vmem:[#allocation11_spill] sm:$0xff] %v3368_v14  ;;  %2006 = vmatpush3.bf16.msra.mxu0 %v2708_v33  ;;  %2046 = vmatpush3.bf16.msra.mxu1 %v2708_v33  ;;  %v4361_v33 = vld [vmem:[#allocation35_spill] sm:$0xff] }
  0x86   : > { %2314 = vrot.lane.b32.xlu1 %v4347_v6, %s2723_s21  ;;  %2319 = vrot.lane.b32.xlu0 %v4350_v46, %s2723_s21 }
  0x87   : > { %2007 = vmatprep.subr.bf16.mxu0 %v2709_v53  ;;  %2044 = vmatprep.subr.bf16.mxu1 %v2709_v53 }
  0x88   : > { %v3372_v39 = vpop.permute.xlu0 %2069 }
  0x89   : > { %2008 = vmatpush3.bf16.msra.mxu0 %v2709_v53  ;;  %2047 = vmatpush3.bf16.msra.mxu1 %v2709_v53 }
  0x8a   : > { %2324 = vrot.lane.b32.xlu1 %v2323_v48, %s2723_s21  ;;  %2329 = vrot.lane.b32.xlu0 %v2328_v35, %s2723_s21 }
  0x8b   : > { %2049 = vmatprep.subr.msk.bf16.mxu0 %vm1701_vm3, %v2710_v31  ;;  %2050 = vmatprep.subr.msk.bf16.mxu1 %vm1701_vm3, %v2710_v31 }
  0x8e   : > { %2334 = vrot.lane.b32.xlu1 %v4354_v36, %s2723_s21  ;;  %v3378_v37 = vpop.permute.xlu1 %2079  ;;  %2339 = vrot.lane.b32.xlu0 %v3127_v28, %s2724_s22 }
  0x90   : > { %v3382_v7 = vpop.permute.xlu0 %2074 }
  0x92   : > { %2344 = vrot.lane.b32.xlu1 %v3208_v60, %s2724_s22  ;;  %v3386_v48 = vpop.permute.xlu1 %2084  ;;  %2349 = vrot.lane.b32.xlu0 %v3136_v55, %s2724_s22 }
  0x96   : > { %2354 = vrot.lane.b32.xlu1 %v3210_v59, %s2724_s22  ;;  %v3395_v13 = vpop.permute.xlu0 %2089  ;;  %2359 = vrot.lane.b32.xlu0 %v3263_v10, %s2725_s25 }
  0x98   : > { %v3399_v28 = vpop.permute.xlu1 %2094 }
  0x9a   : > { %2364 = vrot.lane.b32.xlu1 %v2273_v50, %s2725_s25  ;;  %2369 = vrot.lane.b32.xlu0 %v3268_v38, %s2725_s25  ;;  %v3407_v22 = vpop.permute.xlu0 %2099  ;;  %v1703_v38 = vsel %vm1701_vm3, %v2710_v31, 0  ;;  %v4355_v50 = vld [vmem:[#allocation32_spill] sm:$0xff] }
  0x9b   : > { %2010 = vmatpush3.bf16.msra.mxu0 %v1703_v38  ;;  %2048 = vmatpush3.bf16.msra.mxu1 %v1703_v38  ;;  %v2101_v60 = vunpack.i.l.bf16 %v3407_v22 }
  0x9e   : > { %2374 = vrot.lane.b32.xlu1 %v3314_v27, %s2725_s25  ;;  %v3414_v10 = vpop.permute.xlu1 %2104  ;;  %2379 = vrot.lane.b32.xlu0 %v4347_v6, %s2726_s30 }
  0xa0   : > { %v3418_v30 = vpop.permute.xlu0 %2109 }
  0xa2   : > { %2384 = vrot.lane.b32.xlu1 %v4355_v50, %s2726_s30  ;;  %2389 = vrot.lane.b32.xlu0 %v4350_v46, %s2726_s30  ;;  %v3424_v27 = vpop.permute.xlu1 %2114  ;;  %v4359_v46 = vld [vmem:[#allocation33_spill] sm:$0xff]  ;;  %v2092_v50 = vunpack.i.h.bf16 %v3395_v13 }
  0xa3   : > { %v2418_v15 = vpack.i.bf16 %v4360_v34, %v4359_v46  ;;  %v2096_v46 = vunpack.i.l.bf16 %v3399_v28 }
  0xa6   : > { %2394 = vrot.lane.b32.xlu1 %v4356_v45, %s2726_s30  ;;  %v3428_v49 = vpop.permute.xlu0 %2119  ;;  %2399 = vrot.lane.b32.xlu0 %v3136_v55, %s2727_s4 }
  0xa7   : > { %4357 = vst [vmem:[#allocation9_spill] sm:$0xff] %v3428_v49  ;;  %v2102_v49 = vunpack.i.h.bf16 %v3407_v22  ;;  %v2107_v22 = vunpack.i.h.bf16 %v3414_v10 }
  0xa8   : > { %v3432_v6 = vpop.permute.xlu1 %2124 }
  0xa9   : > { %4358 = vst [vmem:[#allocation13_spill] sm:$0xff] %v3432_v6 }
  0xaa   : > { %2404 = vrot.lane.b32.xlu1 %v3210_v59, %s2727_s4  ;;  %2409 = vrot.lane.b32.xlu0 %v3150_v17, %s2727_s4 }
  0xac   : > { %v3440_v35 = vpop.permute.xlu0 %2129 }
  0xae   : > { %2414 = vrot.lane.b32.xlu1 %v3226_v20, %s2727_s4  ;;  %v3444_v36 = vpop.permute.xlu1 %2134  ;;  %2419 = vrot.lane.b32.xlu0 %v2418_v15, %s2723_s21 }
  0xb0   : > { %v3447_v55 = vpop.permute.xlu0 %2139 }
  0xb2   : > { %2424 = vrot.lane.b32.xlu1 %v4361_v33, %s2723_s21  ;;  %2429 = vrot.lane.b32.xlu0 %v3150_v17, %s2724_s22  ;;  %v2091_v17 = vunpack.i.l.bf16 %v3395_v13  ;;  %v1355_v13 = vsel %vm1345_vm4, %v2858_v4, %v2092_v50 }
  0xb4   : > { %v3453_v59 = vpop.permute.xlu1 %2144  ;;  %v3455_v53 = vpop.permute.xlu0 %2149 }
  0xb6   : > { %2434 = vrot.lane.b32.xlu1 %v3226_v20, %s2724_s22  ;;  %2439 = vrot.lane.b32.xlu0 %v3162_v16, %s2724_s22  ;;  %v2097_v20 = vunpack.i.h.bf16 %v3399_v28 }
  0xb8   : > { %v3461_v31 = vpop.permute.xlu1 %2154  ;;  %v3463_v38 = vpop.permute.xlu0 %2159  ;;  %v1357_v4 = vsel %vm1345_vm4, %v2873_v11, %v2097_v20  ;;  %v1358_v11 = vsel %vm1345_vm4, %v2897_v26, %v2101_v60  ;;  %v1361_v26 = vsel %vm1345_vm4, %v2920_v56, %v2107_v22  ;;  %v4365_v56 = vld [vmem:[#allocation36_spill] sm:$0xff]  ;;  %v2136_v22 = vunpack.i.l.bf16 %v3444_v36 }
  0xb9   : > { %4362 = vst [vmem:[#allocation24_spill] sm:$0xff] %v3461_v31 }
  0xba   : > { %2444 = vrot.lane.b32.xlu1 %v3232_v0, %s2724_s22  ;;  %2449 = vrot.lane.b32.xlu0 %v3274_v51, %s2725_s25  ;;  %v1354_v51 = vsel %vm1345_vm4, %v2846_v57, %v2091_v17  ;;  %v1356_v57 = vsel %vm1345_vm4, %v2868_v9, %v2096_v46  ;;  %v4363_v46 = vld [vmem:[#allocation15_spill] sm:$0xff] }
  0xbc   : > { %v3471_v45 = vpop.permute.xlu1 %2164  ;;  %v2170_v34 = vpop.permute.xlu0 %2169 }
  0xbd   : > { %v2172_v15 = vunpack.i.h.bf16 %v2170_v34  ;;  %v2171_v6 = vunpack.i.l.bf16 %v2170_v34 }
  0xbe   : > { %2454 = vrot.lane.b32.xlu1 %v3321_v52, %s2725_s25  ;;  %2459 = vrot.lane.b32.xlu0 %v3280_v44, %s2725_s25  ;;  %v2106_v44 = vunpack.i.l.bf16 %v3414_v10 }
  0xbf   : > { %v3486_v28 = vsel %vm1378_vm5, %v1354_v51, %v2171_v6  ;;  %v3489_v34 = vsel %vm1378_vm5, %v1355_v13, %v2172_v15  ;;  %v1359_v15 = vsel %vm1345_vm4, %v2894_v25, %v2102_v49 }
  0xc0   : > { %v2175_v52 = vpop.permute.xlu1 %2174  ;;  %v2180_v14 = vpop.permute.xlu0 %2179  ;;  %v1360_v60 = vsel %vm1345_vm4, %v2923_v58, %v2106_v44  ;;  %v2132_v58 = vunpack.i.h.bf16 %v3440_v35 }
  0xc1   : > { %v2177_v50 = vunpack.i.h.bf16 %v2175_v52  ;;  %v2176_v17 = vunpack.i.l.bf16 %v2175_v52  ;;  %v2182_v31 = vunpack.i.h.bf16 %v2180_v14  ;;  %v2181_v6 = vunpack.i.l.bf16 %v2180_v14  ;;  %v4364_v52 = vld [vmem:[#allocation16_spill] sm:$0xff] }
  0xc2   : > { %2464 = vrot.lane.b32.xlu1 %v3327_v40, %s2725_s25  ;;  %2469 = vrot.lane.b32.xlu0 %v4363_v46, %s2726_s30  ;;  %v2141_v46 = vunpack.i.l.bf16 %v3447_v55 }
  0xc3   : > { %v3504_v9 = vsel %vm1378_vm5, %v1357_v4, %v2177_v50  ;;  %v3507_v20 = vsel %vm1378_vm5, %v1356_v57, %v2176_v17  ;;  %v3512_v14 = vsel %vm1378_vm5, %v1358_v11, %v2181_v6  ;;  %v3515_v40 = vsel %vm1378_vm5, %v1359_v15, %v2182_v31 }
  0xc4   : > { %v2185_v10 = vpop.permute.xlu1 %2184  ;;  %v3517_v13 = vpop.permute.xlu0 %2189  ;;  %v2137_v17 = vunpack.i.h.bf16 %v3444_v36  ;;  %v1371_v11 = vsel %vm1345_vm4, %v3040_v61, %v2132_v58 }
  0xc5   : > { %v2187_v25 = vunpack.i.h.bf16 %v2185_v10  ;;  %v2186_v49 = vunpack.i.l.bf16 %v2185_v10 }
  0xc6   : > { %2474 = vrot.lane.b32.xlu1 %v4361_v33, %s2726_s30  ;;  %2479 = vrot.lane.b32.xlu0 %v4364_v52, %s2726_s30  ;;  %v2131_v33 = vunpack.i.l.bf16 %v3440_v35  ;;  %v1373_v61 = vsel %vm1345_vm4, %v3052_v62, %v2137_v17  ;;  %v1374_v62 = vsel %vm1345_vm4, %v3075_v54, %v2141_v46  ;;  %v4366_v46 = vld [vmem:[#allocation17_spill] sm:$0xff] }
  0xc7   : > { %v3526_v51 = vsel %vm1378_vm5, %v1361_v26, %v2187_v25  ;;  %v3529_v31 = vsel %vm1378_vm5, %v1360_v60, %v2186_v49  ;;  %v2146_v60 = vunpack.i.l.bf16 %v3453_v59 }
  0xc8   : > { %v3533_v4 = vpop.permute.xlu1 %2194  ;;  %v3535_v57 = vpop.permute.xlu0 %2199  ;;  %v1370_v35 = vsel %vm1345_vm4, %v3027_v21, %v2131_v33  ;;  %v1372_v21 = vsel %vm1345_vm4, %v3055_v47, %v2136_v22 }
  0xca   : > { %2484 = vrot.lane.b32.xlu1 %v4365_v56, %s2726_s30  ;;  %2489 = vrot.lane.b32.xlu0 %v3162_v16, %s2727_s4  ;;  %v2142_v16 = vunpack.i.h.bf16 %v3447_v55  ;;  %v2147_v55 = vunpack.i.h.bf16 %v3453_v59 }
  0xcc   : > { %v3543_v50 = vpop.permute.xlu1 %2204  ;;  %v2210_v44 = vpop.permute.xlu0 %2209  ;;  %v1377_v54 = vsel %vm1345_vm4, %v3099_v23, %v2147_v55  ;;  %v4367_v23 = vld [vmem:[#allocation38_spill] sm:$0xff] }
  0xcd   : > { %v2212_v6 = vunpack.i.h.bf16 %v2210_v44  ;;  %v2211_v15 = vunpack.i.l.bf16 %v2210_v44  ;;  %v1375_v44 = vsel %vm1345_vm4, %v3072_v1, %v2142_v16 }
  0xce   : > { %2494 = vrot.lane.b32.xlu1 %v3232_v0, %s2727_s4  ;;  %2499 = vrot.lane.b32.xlu0 %v3170_v32, %s2727_s4 }
  0xcf   : > { %v3558_v36 = vsel %vm1378_vm5, %v1370_v35, %v2211_v15  ;;  %v3561_v10 = vsel %vm1378_vm5, %v1371_v11, %v2212_v6  ;;  %v1376_v35 = vsel %vm1345_vm4, %v3102_v43, %v2146_v60 }
  0xd0   : > { %v2215_v0 = vpop.permute.xlu1 %2214  ;;  %v2220_v26 = vpop.permute.xlu0 %2219 }
  0xd1   : > { %v2217_v25 = vunpack.i.h.bf16 %v2215_v0  ;;  %v2216_v49 = vunpack.i.l.bf16 %v2215_v0  ;;  %v2222_v58 = vunpack.i.h.bf16 %v2220_v26  ;;  %v2221_v33 = vunpack.i.l.bf16 %v2220_v26 }
  0xd2   : > { %2504 = vrot.lane.b32.xlu1 %v3241_v3, %s2727_s4  ;;  %2509 = vrot.lane.b32.xlu0 %v4364_v52, %s2723_s21 }
  0xd3   : > { %v3576_v47 = vsel %vm1378_vm5, %v1373_v61, %v2217_v25  ;;  %v3579_v17 = vsel %vm1378_vm5, %v1372_v21, %v2216_v49  ;;  %v3584_v59 = vsel %vm1378_vm5, %v1374_v62, %v2221_v33  ;;  %v3587_v22 = vsel %vm1378_vm5, %v1375_v44, %v2222_v58 }
  0xd4   : > { %v2225_v6 = vpop.permute.xlu1 %2224  ;;  %v3589_v11 = vpop.permute.xlu0 %2229 }
  0xd5   : > { %v2227_v1 = vunpack.i.h.bf16 %v2225_v6  ;;  %v2226_v15 = vunpack.i.l.bf16 %v2225_v6 }
  0xd6   : > { %2514 = vrot.lane.b32.xlu1 %v4365_v56, %s2723_s21  ;;  %2519 = vrot.lane.b32.xlu0 %v4366_v46, %s2723_s21 }
  0xd7   : > { %v3598_v52 = vsel %vm1378_vm5, %v1377_v54, %v2227_v1  ;;  %v3601_v16 = vsel %vm1378_vm5, %v1376_v35, %v2226_v15 }
  0xd8   : > { %v3605_v0 = vpop.permute.xlu1 %2234  ;;  %v3607_v61 = vpop.permute.xlu0 %2239 }
  0xda   : > { %2524 = vrot.lane.b32.xlu1 %v4367_v23, %s2723_s21  ;;  %2529 = vrot.lane.b32.xlu0 %v3170_v32, %s2724_s22 }
  0xdc   : > { %v3613_v43 = vpop.permute.xlu1 %2244  ;;  %v2250_v56 = vpop.permute.xlu0 %2249 }
  0xdd   : > { %v2252_v21 = vunpack.i.h.bf16 %v2250_v56  ;;  %v2251_v25 = vunpack.i.l.bf16 %v2250_v56 }
  0xde   : > { %2534 = vrot.lane.b32.xlu1 %v3241_v3, %s2724_s22  ;;  %2539 = vrot.lane.b32.xlu0 %v3183_v8, %s2724_s22 }
  0xdf   : > { %v3621_v49 = vsel %vm1411_vm6, %v3486_v28, %v2251_v25  ;;  %v3625_v26 = vsel %vm1411_vm6, %v3489_v34, %v2252_v21 }
  0xe0   : > { %v2255_v32 = vpop.permute.xlu1 %2254  ;;  %v2260_v58 = vpop.permute.xlu0 %2259 }
  0xe1   : > { %v2257_v55 = vunpack.i.h.bf16 %v2255_v32  ;;  %v2256_v60 = vunpack.i.l.bf16 %v2255_v32  ;;  %v2262_v33 = vunpack.i.h.bf16 %v2260_v58  ;;  %v2261_v44 = vunpack.i.l.bf16 %v2260_v58 }
  0xe2   : > { %2544 = vrot.lane.b32.xlu1 %v3247_v24, %s2724_s22  ;;  %2549 = vrot.lane.b32.xlu0 %v3286_v63, %s2725_s25 }
  0xe3   : > { %v3631_v3 = vsel %vm1411_vm6, %v3507_v20, %v2256_v60  ;;  %v3635_v28 = vsel %vm1411_vm6, %v3504_v9, %v2257_v55  ;;  %v3641_v34 = vsel %vm1411_vm6, %v3512_v14, %v2261_v44  ;;  %v3645_v62 = vsel %vm1411_vm6, %v3515_v40, %v2262_v33 }
  0xe4   : > { %v2265_v6 = vpop.permute.xlu1 %2264  ;;  %v3647_v20 = vpop.permute.xlu0 %2269  ;;  %v2162_v44 = vunpack.i.h.bf16 %v3463_v38 }
  0xe5   : > { %v2267_v1 = vunpack.i.h.bf16 %v2265_v6  ;;  %v2266_v15 = vunpack.i.l.bf16 %v2265_v6 }
  0xe6   : > { %2554 = vrot.lane.b32.xlu1 %v3333_v42, %s2725_s25  ;;  %2559 = vrot.lane.b32.xlu0 %v3292_v19, %s2725_s25  ;;  %v4370_v19 = vld [vmem:[#allocation20_spill] sm:$0xff] }
  0xe7   : > { %v3653_v9 = vsel %vm1411_vm6, %v3529_v31, %v2266_v15  ;;  %v3657_v63 = vsel %vm1411_vm6, %v3526_v51, %v2267_v1  ;;  %v2241_v15 = vunpack.i.l.bf16 %v3607_v61 }
  0xe8   : > { %4368 = vst [vmem:[#allocation12_spill] sm:$0xff] %v3653_v9  ;;  %4369 = vst [vmem:[#allocation25_spill] sm:$0xff] %v3657_v63  ;;  %v3661_v14 = vpop.permute.xlu1 %2274  ;;  %v3663_v40 = vpop.permute.xlu0 %2279  ;;  %v4385_v9 = vld [vmem:[#allocation22_spill] sm:$0xff]  ;;  %v2197_v63 = vunpack.i.h.bf16 %v3533_v4 }
  0xea   : > { %2564 = vrot.lane.b32.xlu1 %v3339_v41, %s2725_s25  ;;  %2569 = vrot.lane.b32.xlu0 %v4366_v46, %s2726_s30 }
  0xec   : > { %v3669_v42 = vpop.permute.xlu1 %2284  ;;  %v2290_v31 = vpop.permute.xlu0 %2289 }
  0xed   : > { %v2292_v54 = vunpack.i.h.bf16 %v2290_v31  ;;  %v2291_v35 = vunpack.i.l.bf16 %v2290_v31 }
  0xee   : > { %2574 = vrot.lane.b32.xlu1 %v4367_v23, %s2726_s30  ;;  %2579 = vrot.lane.b32.xlu0 %v4370_v19, %s2726_s30 }
  0xef   : > { %v3677_v51 = vsel %vm1411_vm6, %v3558_v36, %v2291_v35  ;;  %v3681_v41 = vsel %vm1411_vm6, %v3561_v10, %v2292_v54  ;;  %v2082_v10 = vunpack.i.h.bf16 %v3378_v37  ;;  %v2166_v54 = vunpack.i.l.bf16 %v3471_v45 }
  0xf0   : > { %v2295_v46 = vpop.permute.xlu1 %2294  ;;  %v2300_v25 = vpop.permute.xlu0 %2299 }
  0xf1   : > { %v2297_v56 = vunpack.i.h.bf16 %v2295_v46  ;;  %v2296_v21 = vunpack.i.l.bf16 %v2295_v46  ;;  %v2302_v32 = vunpack.i.h.bf16 %v2300_v25  ;;  %v2301_v55 = vunpack.i.l.bf16 %v2300_v25 }
  0xf2   : > { %2584 = vrot.lane.b32.xlu1 %v3122_v18, %s2726_s30  ;;  %2589 = vrot.lane.b32.xlu0 %v3183_v8, %s2727_s4  ;;  %v2161_v8 = vunpack.i.l.bf16 %v3463_v38  ;;  %v1351_v38 = vsel %vm1345_vm4, %v4341_v5, %v2082_v10  ;;  %v2246_v46 = vunpack.i.l.bf16 %v3613_v43 }
  0xf3   : > { %v3687_v23 = vsel %vm1411_vm6, %v3579_v17, %v2296_v21  ;;  %v3691_v36 = vsel %vm1411_vm6, %v3576_v47, %v2297_v56  ;;  %v3698_v60 = vsel %vm1411_vm6, %v3584_v59, %v2301_v55  ;;  %v3702_v58 = vsel %vm1411_vm6, %v3587_v22, %v2302_v32 }
  0xf4   : > { %4371 = vst [vmem:[#allocation31_spill] sm:$0xff] %v3702_v58  ;;  %v2305_v33 = vpop.permute.xlu1 %2304  ;;  %v2081_v17 = vunpack.i.l.bf16 %v3378_v37  ;;  %v3706_v1 = vpop.permute.xlu0 %2309  ;;  %v2242_v59 = vunpack.i.h.bf16 %v3607_v61  ;;  %v2196_v58 = vunpack.i.l.bf16 %v3533_v4  ;;  %v2236_v4 = vunpack.i.l.bf16 %v3605_v0 }
  0xf5   : > { %v2307_v47 = vunpack.i.h.bf16 %v2305_v33  ;;  %v2306_v6 = vunpack.i.l.bf16 %v2305_v33 }
  0xf6   : > { %2594 = vrot.lane.b32.xlu1 %v3247_v24, %s2727_s4  ;;  %2599 = vrot.lane.b32.xlu0 %v3188_v12, %s2727_s4  ;;  %v2086_v24 = vunpack.i.l.bf16 %v3386_v48  ;;  %v1350_v61 = vsel %vm1345_vm4, %v2801_v29, %v2081_v17  ;;  %v4374_v29 = vld [vmem:[#allocation10_spill] sm:$0xff]  ;;  %v2072_v17 = vunpack.i.h.bf16 %v3372_v39 }
  0xf7   : > { %v3715_v22 = vsel %vm1411_vm6, %v3601_v16, %v2306_v6  ;;  %v3719_v37 = vsel %vm1411_vm6, %v3598_v52, %v2307_v47  ;;  %v1384_v16 = vsel %vm1378_vm5, %v1351_v38, %v2162_v44  ;;  %v1383_v52 = vsel %vm1378_vm5, %v1350_v61, %v2161_v8  ;;  %v4375_v38 = vld [vmem:[#allocation23_spill] sm:$0xff]  ;;  %v4376_v61 = vld [vmem:[#allocation2_spill] sm:$0xff] }
  0xf8   : > { %4372 = vst [vmem:[#allocation32_spill] sm:$0xff] %v3715_v22  ;;  %4373 = vst [vmem:[#allocation34_spill] sm:$0xff] %v3719_v37  ;;  %v3726_v31 = vpop.permute.xlu1 %2314  ;;  %v2320_v35 = vpop.permute.xlu0 %2319  ;;  %v1416_v5 = vsel %vm1411_vm6, %v1383_v52, %v2241_v15  ;;  %v1417_v25 = vsel %vm1411_vm6, %v1384_v16, %v2242_v59  ;;  %v1352_v32 = vsel %vm1345_vm4, %v4374_v29, %v2086_v24  ;;  %v2071_v44 = vunpack.i.l.bf16 %v3372_v39  ;;  %v4383_v37 = vld [vmem:[#allocation19_spill] sm:$0xff] }
  0xf9   : > { %v2322_v56 = vunpack.i.h.bf16 %v2320_v35  ;;  %v2321_v21 = vunpack.i.l.bf16 %v2320_v35  ;;  %v1385_v47 = vsel %vm1378_vm5, %v1352_v32, %v2166_v54  ;;  %v2077_v59 = vunpack.i.h.bf16 %v3382_v7  ;;  %v4377_v54 = vld [vmem:[#allocation3_spill] sm:$0xff] }
  0xfa   : > { %2604 = vrot.lane.b32.xlu1 %v3253_v2, %s2727_s4  ;;  %2609 = vrot.lane.b32.xlu0 %v4370_v19, %s2723_s21  ;;  %v1418_v8 = vsel %vm1411_vm6, %v1385_v47, %v2246_v46  ;;  %v2076_v39 = vunpack.i.l.bf16 %v3382_v7  ;;  %v1347_v16 = vsel %vm1345_vm4, %v4376_v61, %v2072_v17  ;;  %v1346_v35 = vsel %vm1345_vm4, %v4377_v54, %v2071_v44  ;;  %v4380_v32 = vld [vmem:[#allocation7_spill] sm:$0xff] }
  0xfb   : > { %v3743_v55 = vsel %vm1444_vm7, %v1416_v5, %v2321_v21  ;;  %v3746_v10 = vsel %vm1444_vm7, %v1417_v25, %v2322_v56  ;;  %v2111_v46 = vunpack.i.l.bf16 %v3418_v30  ;;  %v4378_v56 = vld [vmem:[#allocation43_spill] sm:$0xff]  ;;  %v4379_v21 = vld [vmem:[#allocation6_spill] sm:$0xff]  ;;  %v2117_v25 = vunpack.i.h.bf16 %v3424_v27 }
  0xfc   : > { %v3748_v33 = vpop.permute.xlu1 %2324  ;;  %v3754_v19 = vpop.permute.xlu0 %2329  ;;  %v1349_v5 = vsel %vm1345_vm4, %v4379_v21, %v2077_v59  ;;  %v2116_v29 = vunpack.i.l.bf16 %v3424_v27  ;;  %v1348_v17 = vsel %vm1345_vm4, %v4380_v32, %v2076_v39  ;;  %v2151_v44 = vunpack.i.l.bf16 %v3455_v53  ;;  %v4382_v27 = vld [vmem:[#allocation18_spill] sm:$0xff] }
  0xfd   : > { %v2326_v6 = vunpack.i.l.bf16 %v3748_v33  ;;  %v2191_v21 = vunpack.i.l.bf16 %v3517_v13  ;;  %v1362_v39 = vsel %vm1345_vm4, %v4383_v37, %v2111_v46  ;;  %v2192_v32 = vunpack.i.h.bf16 %v3517_v13 }
  0xfe   : > { %2614 = vrot.lane.b32.xlu1 %v3122_v18, %s2723_s21  ;;  %2619 = vrot.lane.b32.xlu0 %v4375_v38, %s2723_s21  ;;  %v2112_v18 = vunpack.i.h.bf16 %v3418_v30  ;;  %v2152_v30 = vunpack.i.h.bf16 %v3455_v53  ;;  %v4384_v53 = vld [vmem:[#allocation21_spill] sm:$0xff]  ;;  %v1379_v13 = vsel %vm1378_vm5, %v1346_v35, %v2151_v44  ;;  %v2232_v46 = vunpack.i.h.bf16 %v3589_v11  ;;  %v4387_v44 = vld [vmem:[#allocation11_spill] sm:$0xff] }
  0xff   : > { %v3761_v15 = vsel %vm1444_vm7, %v1418_v8, %v2326_v6  ;;  %v4381_v6 = vld [vmem:[#allocation24_spill] sm:$0xff]  ;;  %v1365_v22 = vsel %vm1345_vm4, %v4384_v53, %v2117_v25  ;;  %v2237_v35 = vunpack.i.h.bf16 %v3605_v0 }
 0x100   : > { %v3766_v24 = vpop.permute.xlu1 %2334  ;;  %v3772_v52 = vpop.permute.xlu0 %2339  ;;  %v2157_v8 = vunpack.i.h.bf16 %v4381_v6  ;;  %v2156_v59 = vunpack.i.l.bf16 %v4381_v6  ;;  %v1364_v6 = vsel %vm1345_vm4, %v4385_v9, %v2116_v29  ;;  %v1380_v37 = vsel %vm1378_vm5, %v1347_v16, %v2152_v30 }
 0x101   : > { %v1395_v29 = vsel %vm1378_vm5, %v1362_v39, %v2191_v21  ;;  %v2272_v30 = vunpack.i.h.bf16 %v3647_v20  ;;  %v4388_v21 = vld [vmem:[#allocation5_spill] sm:$0xff]  ;;  %v2311_v39 = vunpack.i.l.bf16 %v3706_v1 }
 0x102   : > { %2624 = vrot.lane.b32.xlu1 %v4378_v56, %s2723_s21  ;;  %2629 = vrot.lane.b32.xlu0 %v3188_v12, %s2724_s22  ;;  %v1363_v12 = vsel %vm1345_vm4, %v4382_v27, %v2112_v18  ;;  %v4386_v18 = vld [vmem:[#allocation39_spill] sm:$0xff]  ;;  %v1381_v25 = vsel %vm1378_vm5, %v1348_v17, %v2156_v59  ;;  %v1382_v9 = vsel %vm1378_vm5, %v1349_v5, %v2157_v8  ;;  %v2277_v8 = vunpack.i.h.bf16 %v3661_v14 }
 0x103   : > { %v1396_v16 = vsel %vm1378_vm5, %v1363_v12, %v2192_v32  ;;  %v1398_v5 = vsel %vm1378_vm5, %v1365_v22, %v2197_v63  ;;  %v1397_v17 = vsel %vm1378_vm5, %v1364_v6, %v2196_v58  ;;  %v2276_v59 = vunpack.i.l.bf16 %v3661_v14 }
 0x104   : > { %v3790_v47 = vpop.permute.xlu1 %2344  ;;  %v3795_v7 = vpop.permute.xlu0 %2349  ;;  %v1413_v12 = vsel %vm1411_vm6, %v1380_v37, %v2232_v46  ;;  %v1414_v63 = vsel %vm1411_vm6, %v1381_v25, %v2236_v4  ;;  %v2317_v58 = vunpack.i.h.bf16 %v3726_v31  ;;  %v2316_v22 = vunpack.i.l.bf16 %v3726_v31 }
 0x105   : > { %v2327_v14 = vunpack.i.h.bf16 %v3748_v33  ;;  %v1429_v46 = vsel %vm1411_vm6, %v1396_v16, %v2272_v30  ;;  %v1430_v25 = vsel %vm1411_vm6, %v1397_v17, %v2276_v59  ;;  %v1431_v31 = vsel %vm1411_vm6, %v1398_v5, %v2277_v8 }
 0x106   : > { %2634 = vrot.lane.b32.xlu1 %v3253_v2, %s2724_s22  ;;  %2639 = vrot.lane.b32.xlu0 %v4386_v18, %s2724_s22  ;;  %v2231_v2 = vunpack.i.l.bf16 %v3589_v11  ;;  %v2271_v11 = vunpack.i.l.bf16 %v3647_v20  ;;  %v2312_v20 = vunpack.i.h.bf16 %v3706_v1  ;;  %v2332_v1 = vunpack.i.h.bf16 %v3754_v19 }
 0x107   : > { %v2331_v33 = vunpack.i.l.bf16 %v3754_v19  ;;  %v2336_v4 = vunpack.i.l.bf16 %v3766_v24  ;;  %v2342_v16 = vunpack.i.h.bf16 %v3772_v52  ;;  %v2346_v17 = vunpack.i.l.bf16 %v3790_v47 }
 0x108   : > { %v3816_v27 = vpop.permute.xlu1 %2354  ;;  %v3822_v53 = vpop.permute.xlu0 %2359  ;;  %v1412_v0 = vsel %vm1411_vm6, %v1379_v13, %v2231_v2  ;;  %v1415_v13 = vsel %vm1411_vm6, %v1382_v9, %v2237_v35  ;;  %v1428_v37 = vsel %vm1411_vm6, %v1395_v29, %v2271_v11  ;;  %v4389_v2 = vld [vmem:[#allocation42_spill] sm:$0xff]  ;;  %v1446_v29 = vsel %vm1444_vm7, %v1413_v12, %v2312_v20 }
 0x109   : > { %v1445_v9 = vsel %vm1444_vm7, %v1412_v0, %v2311_v39  ;;  %v2341_v35 = vunpack.i.l.bf16 %v3772_v52  ;;  %v1447_v11 = vsel %vm1444_vm7, %v1414_v63, %v2316_v22  ;;  %v1448_v19 = vsel %vm1444_vm7, %v1415_v13, %v2317_v58 }
 0x10a   : > { %2644 = vrot.lane.b32.xlu1 %v4387_v44, %s2724_s22  ;;  %2649 = vrot.lane.b32.xlu0 %v4388_v21, %s2725_s25  ;;  %v4390_v21 = vld [vmem:[#allocation41_spill] sm:$0xff]  ;;  %v1461_v5 = vsel %vm1444_vm7, %v1428_v37, %v2327_v14  ;;  %v1463_v59 = vsel %vm1444_vm7, %v1430_v25, %v2332_v1  ;;  %v2347_v0 = vunpack.i.h.bf16 %v3790_v47  ;;  %v2352_v12 = vunpack.i.h.bf16 %v3795_v7 }
 0x10b   : > { %v2351_v52 = vunpack.i.l.bf16 %v3795_v7  ;;  %v4391_v20 = vpack.i.bf16 %v4376_v61, %v4377_v54  ;;  %v1462_v39 = vsel %vm1444_vm7, %v1429_v46, %v2331_v33  ;;  %v1464_v63 = vsel %vm1444_vm7, %v1431_v31, %v2336_v4 }
 0x10c   : > { %v3840_v32 = vpop.permute.xlu1 %2364  ;;  %v3846_v6 = vpop.permute.xlu0 %2369  ;;  %v2357_v58 = vunpack.i.h.bf16 %v3816_v27  ;;  %v2356_v22 = vunpack.i.l.bf16 %v3816_v27  ;;  %v1478_v47 = vsel %vm1477_vm8, %v1445_v9, %v2341_v35  ;;  %v1479_v7 = vsel %vm1477_vm8, %v1446_v29, %v2342_v16 }
 0x10d   : > { %v2362_v14 = vunpack.i.h.bf16 %v3822_v53  ;;  %v2361_v61 = vunpack.i.l.bf16 %v3822_v53  ;;  %v1494_v13 = vsel %vm1477_vm8, %v1461_v5, %v2346_v17  ;;  %v2367_v37 = vunpack.i.h.bf16 %v3840_v32 }
 0x10e   : > { %2654 = vrot.lane.b32.xlu1 %v4389_v2, %s2725_s25  ;;  %2659 = vrot.lane.b32.xlu0 %v4390_v21, %s2725_s25  ;;  %v2366_v46 = vunpack.i.l.bf16 %v3840_v32  ;;  %v2371_v27 = vunpack.i.l.bf16 %v3846_v6  ;;  %v1480_v2 = vsel %vm1477_vm8, %v1447_v11, %v2351_v52  ;;  %v1481_v25 = vsel %vm1477_vm8, %v1448_v19, %v2352_v12  ;;  %v4392_v21 = vld [vmem:[#allocation28_spill] sm:$0xff] }
 0x10f   : > { %v2372_v31 = vunpack.i.h.bf16 %v3846_v6  ;;  %v1496_v53 = vsel %vm1477_vm8, %v1463_v59, %v2356_v22  ;;  %v1497_v33 = vsel %vm1477_vm8, %v1464_v63, %v2357_v58  ;;  %v1511_v9 = vsel %vm1510_vm9, %v1478_v47, %v2361_v61  ;;  %v4393_v52 = vld [vmem:[#allocation4_spill] sm:$0xff] }
 0x110   : > { %v3864_v30 = vpop.permute.xlu1 %2374  ;;  %v2380_v8 = vpop.permute.xlu0 %2379  ;;  %v1512_v29 = vsel %vm1510_vm9, %v1479_v7, %v2362_v14  ;;  %v1527_v6 = vsel %vm1510_vm9, %v1494_v13, %v2366_v46  ;;  %v1513_v19 = vsel %vm1510_vm9, %v1480_v2, %v2371_v27 }
 0x111   : > { %v2382_v4 = vunpack.i.h.bf16 %v2380_v8  ;;  %v2381_v32 = vunpack.i.l.bf16 %v2380_v8  ;;  %v1514_v8 = vsel %vm1510_vm9, %v1481_v25, %v2372_v31  ;;  %v2377_v59 = vunpack.i.h.bf16 %v3864_v30  ;;  %v4394_v25 = vld [vmem:[#allocation40_spill] sm:$0xff] }
 0x112   : > { %2664 = vrot.lane.b32.xlu1 %v4391_v20, %s2725_s25  ;;  %2669 = vrot.lane.b32.xlu0 %v4375_v38, %s2726_s30  ;;  %v1495_v38 = vsel %vm1477_vm8, %v1462_v39, %v2347_v0  ;;  %v2376_v20 = vunpack.i.l.bf16 %v3864_v30 }
 0x113   : > { %v1544_v63 = vsel %vm1543_vm10, %v1511_v9, %v2381_v32  ;;  %v1545_v58 = vsel %vm1543_vm10, %v1512_v29, %v2382_v4 }
 0x114   : > { %v2385_v54 = vpop.permute.xlu1 %2384  ;;  %v2390_v1 = vpop.permute.xlu0 %2389  ;;  %v1529_v32 = vsel %vm1510_vm9, %v1496_v53, %v2376_v20 }
 0x115   : > { %v2387_v16 = vunpack.i.h.bf16 %v2385_v54  ;;  %v2386_v35 = vunpack.i.l.bf16 %v2385_v54  ;;  %v2391_v5 = vunpack.i.l.bf16 %v2390_v1  ;;  %v2392_v39 = vunpack.i.h.bf16 %v2390_v1 }
 0x116   : > { %2674 = vrot.lane.b32.xlu1 %v4378_v56, %s2726_s30  ;;  %2679 = vrot.lane.b32.xlu0 %v4392_v21, %s2726_s30  ;;  %v1528_v56 = vsel %vm1510_vm9, %v1495_v38, %v2367_v37 }
 0x117   : > { %v1560_v14 = vsel %vm1543_vm10, %v1527_v6, %v2386_v35  ;;  %v1561_v61 = vsel %vm1543_vm10, %v1528_v56, %v2387_v16  ;;  %v1546_v54 = vsel %vm1543_vm10, %v1513_v19, %v2391_v5  ;;  %v1547_v2 = vsel %vm1543_vm10, %v1514_v8, %v2392_v39  ;;  %v4396_v39 = vld [vmem:[#allocation9_spill] sm:$0xff] }
 0x118   : > { %v2395_v11 = vpop.permute.xlu1 %2394  ;;  %v2400_v17 = vpop.permute.xlu0 %2399 }
 0x119   : > { %v2402_v0 = vunpack.i.h.bf16 %v2400_v17  ;;  %v2401_v12 = vunpack.i.l.bf16 %v2400_v17  ;;  %v2396_v27 = vunpack.i.l.bf16 %v2395_v11  ;;  %v4395_v17 = vld [vmem:[#allocation37_spill] sm:$0xff] }
 0x11a   : > { %2684 = vrot.lane.b32.xlu1 %v4393_v52, %s2726_s30  ;;  %2689 = vrot.lane.b32.xlu0 %v4386_v18, %s2727_s4  ;;  %v2397_v18 = vunpack.i.h.bf16 %v2395_v11  ;;  %v2087_v52 = vunpack.i.h.bf16 %v3386_v48  ;;  %v4399_v48 = vld [vmem:[#allocation26_spill] sm:$0xff] }
 0x11b   : > { %v1577_v47 = vsel %vm1576_vm11, %v1544_v63, %v2401_v12  ;;  %v1578_v7 = vsel %vm1576_vm11, %v1545_v58, %v2402_v0  ;;  %v1562_v19 = vsel %vm1543_vm10, %v1529_v32, %v2396_v27  ;;  %v2122_v63 = vunpack.i.h.bf16 %v4396_v39 }
 0x11c   : > { %v2405_v22 = vpop.permute.xlu1 %2404  ;;  %v2410_v37 = vpop.permute.xlu0 %2409  ;;  %v1609_v46 = vpack.c.bf16 %v1578_v7, %v1577_v47  ;;  %v2121_v58 = vunpack.i.l.bf16 %v4396_v39  ;;  %v2207_v27 = vunpack.i.h.bf16 %v3543_v50 }
 0x11d   : > { %v2407_v30 = vunpack.i.h.bf16 %v2405_v22  ;;  %v2406_v13 = vunpack.i.l.bf16 %v2405_v22  ;;  %v2412_v1 = vunpack.i.h.bf16 %v2410_v37  ;;  %v2411_v38 = vunpack.i.l.bf16 %v2410_v37  ;;  %v4397_v22 = vld [vmem:[#allocation13_spill] sm:$0xff] }
 0x11e   : > { %2694 = vrot.lane.b32.xlu1 %v4387_v44, %s2727_s4  ;;  %2699 = vrot.lane.b32.xlu0 %v4394_v25, %s2727_s4  ;;  %v1530_v44 = vsel %vm1510_vm9, %v1497_v33, %v2377_v59  ;;  %v2127_v47 = vunpack.i.h.bf16 %v4397_v22  ;;  %v2126_v7 = vunpack.i.l.bf16 %v4397_v22  ;;  %v1367_v37 = vsel %vm1345_vm4, %v4399_v48, %v2122_v63 }
 0x11f   : > { %2011 = vmatprep.mubr.msk.bf16.mxu0 %vm1652_vm12, %v1609_v46  ;;  %v1593_v31 = vsel %vm1576_vm11, %v1560_v14, %v2406_v13  ;;  %v1594_v4 = vsel %vm1576_vm11, %v1561_v61, %v2407_v30  ;;  %v1579_v21 = vsel %vm1576_vm11, %v1546_v54, %v2411_v38  ;;  %v1580_v9 = vsel %vm1576_vm11, %v1547_v2, %v2412_v1  ;;  %v4398_v61 = vld [vmem:[#allocation8_spill] sm:$0xff]  ;;  %v4400_v1 = vld [vmem:[#allocation27_spill] sm:$0xff]  ;;  %v4401_v2 = vld [vmem:[#allocation29_spill] sm:$0xff] }
 0x120   : > { %v2415_v29 = vpop.permute.xlu1 %2414  ;;  %v1617_v16 = vpack.c.bf16 %v1594_v4, %v1593_v31  ;;  %v1610_v35 = vpack.c.bf16 %v1580_v9, %v1579_v21  ;;  %v2420_v56 = vpop.permute.xlu0 %2419  ;;  %v1563_v5 = vsel %vm1543_vm10, %v1530_v44, %v2397_v18  ;;  %v1353_v54 = vsel %vm1345_vm4, %v4398_v61, %v2087_v52  ;;  %v4402_v4 = vld [vmem:[#allocation30_spill] sm:$0xff] }
 0x121   : > { %v2417_v11 = vunpack.i.h.bf16 %v2415_v29  ;;  %v2416_v6 = vunpack.i.l.bf16 %v2415_v29  ;;  %v2167_v30 = vunpack.i.h.bf16 %v3471_v45  ;;  %v2202_v46 = vunpack.i.h.bf16 %v3535_v57 }
 0x122   : > { %2704 = vrot.lane.b32.xlu1 %v4395_v17, %s2727_s4  ;;  %2027 = vmatprep.mubr.msk.bf16.mxu1 %vm1652_vm12, %v1617_v16  ;;  %v2201_v18 = vunpack.i.l.bf16 %v3535_v57  ;;  %v1366_v38 = vsel %vm1345_vm4, %v4400_v1, %v2121_v58  ;;  %v1369_v25 = vsel %vm1345_vm4, %v4401_v2, %v2127_v47  ;;  %v2206_v31 = vunpack.i.l.bf16 %v3543_v50 }
 0x123   : > { %v1595_v53 = vsel %vm1576_vm11, %v1562_v19, %v2416_v6  ;;  %v1596_v8 = vsel %vm1576_vm11, %v1563_v5, %v2417_v11  ;;  %2012 = vmatmul.mubr.msk.bf16.vlgmr.msra.gmra.mrb[0].mxu0 %vm1652_vm12, %v1610_v35  ;;  %v2247_v45 = vunpack.i.h.bf16 %v3613_v43  ;;  %v1368_v32 = vsel %vm1345_vm4, %v4402_v4, %v2126_v7 }
 0x124   : > { %v1618_v33 = vpack.c.bf16 %v1596_v8, %v1595_v53  ;;  %v2425_v59 = vpop.permute.xlu1 %2424  ;;  %v3941_v0 = vpop.permute.xlu0 %2429  ;;  %v2282_v21 = vunpack.i.h.bf16 %v3663_v40  ;;  %v2281_v9 = vunpack.i.l.bf16 %v3663_v40  ;;  %v2286_v57 = vunpack.i.l.bf16 %v3669_v42 }
 0x125   : > { %v1386_v16 = vsel %vm1378_vm5, %v1353_v54, %v2167_v30  ;;  %v2287_v44 = vunpack.i.h.bf16 %v3669_v42  ;;  %v2337_v35 = vunpack.i.h.bf16 %v3766_v24  ;;  %v2422_v11 = vunpack.i.h.bf16 %v2420_v56 }
 0x126   : > { %2028 = vmatmul.mubr.msk.bf16.vlgmr.msra.gmra.mrb[0].mxu1 %vm1652_vm12, %v1618_v33  ;;  %v1399_v43 = vsel %vm1378_vm5, %v1366_v38, %v2201_v18  ;;  %v1400_v6 = vsel %vm1378_vm5, %v1367_v37, %v2202_v46  ;;  %v1402_v19 = vsel %vm1378_vm5, %v1369_v25, %v2207_v27  ;;  %v2421_v5 = vunpack.i.l.bf16 %v2420_v56 }
 0x127   : > { %v1401_v40 = vsel %vm1378_vm5, %v1368_v32, %v2206_v31  ;;  %v1419_v17 = vsel %vm1411_vm6, %v1386_v16, %v2247_v45  ;;  %v2427_v53 = vunpack.i.h.bf16 %v2425_v59  ;;  %v2426_v8 = vunpack.i.l.bf16 %v2425_v59 }
 0x128   : > { %v3944_v12 = vpop.permute.xlu1 %2434  ;;  %v3947_v20 = vpop.permute.xlu0 %2439  ;;  %v1432_v33 = vsel %vm1411_vm6, %v1399_v43, %v2281_v9  ;;  %v1433_v42 = vsel %vm1411_vm6, %v1400_v6, %v2282_v21  ;;  %v1434_v24 = vsel %vm1411_vm6, %v1401_v40, %v2286_v57  ;;  %v2431_v52 = vunpack.i.l.bf16 %v3941_v0 }
 0x129   : > { %v1435_v63 = vsel %vm1411_vm6, %v1402_v19, %v2287_v44  ;;  %v1465_v56 = vsel %vm1444_vm7, %v1432_v33, %v2337_v35  ;;  %v1452_v58 = vsel %vm1444_vm7, %v1419_v17, %v2422_v11  ;;  %v2432_v22 = vunpack.i.h.bf16 %v3941_v0 }
 0x12a   : > { %v1466_v59 = vsel %vm1444_vm7, %v1433_v42, %v2421_v5  ;;  %v2437_v7 = vunpack.i.h.bf16 %v3944_v12  ;;  %v2436_v61 = vunpack.i.l.bf16 %v3944_v12  ;;  %v2441_v54 = vunpack.i.l.bf16 %v3947_v20 }
 0x12b   : > { %v1467_v30 = vsel %vm1444_vm7, %v1434_v24, %v2426_v8  ;;  %v1468_v48 = vsel %vm1444_vm7, %v1435_v63, %v2427_v53  ;;  %v2442_v37 = vunpack.i.h.bf16 %v3947_v20  ;;  %v1482_v0 = vsel %vm1477_vm8, %v3743_v55, %v2431_v52 }
 0x12c   : > { %v3953_v14 = vpop.permute.xlu1 %2444  ;;  %v3958_v13 = vpop.permute.xlu0 %2449  ;;  %v1483_v38 = vsel %vm1477_vm8, %v3746_v10, %v2432_v22  ;;  %v1498_v20 = vsel %vm1477_vm8, %v1465_v56, %v2436_v61  ;;  %v1499_v4 = vsel %vm1477_vm8, %v1466_v59, %v2437_v7  ;;  %v1484_v55 = vsel %vm1477_vm8, %v3761_v15, %v2441_v54 }
 0x12d   : > { %v2446_v46 = vunpack.i.l.bf16 %v3953_v14  ;;  %v2447_v18 = vunpack.i.h.bf16 %v3953_v14  ;;  %v2452_v27 = vunpack.i.h.bf16 %v3958_v13  ;;  %v2451_v1 = vunpack.i.l.bf16 %v3958_v13 }
 0x12e   : > { %v1485_v32 = vsel %vm1477_vm8, %v1452_v58, %v2442_v37 }
 0x12f   : > { %v1500_v13 = vsel %vm1477_vm8, %v1467_v30, %v2446_v46  ;;  %v1501_v10 = vsel %vm1477_vm8, %v1468_v48, %v2447_v18  ;;  %v1515_v57 = vsel %vm1510_vm9, %v1482_v0, %v2451_v1 }
 0x130   : > { %v2455_v29 = vpop.permute.xlu1 %2454  ;;  %v2460_v50 = vpop.permute.xlu0 %2459 }
 0x131   : > { %v2457_v2 = vunpack.i.h.bf16 %v2455_v29  ;;  %v2456_v25 = vunpack.i.l.bf16 %v2455_v29  ;;  %v2461_v31 = vunpack.i.l.bf16 %v2460_v50  ;;  %v2462_v14 = vunpack.i.h.bf16 %v2460_v50 }
 0x132   : > { %v1516_v29 = vsel %vm1510_vm9, %v1483_v38, %v2452_v27 }
 0x133   : > { %v1531_v35 = vsel %vm1510_vm9, %v1498_v20, %v2456_v25  ;;  %v1532_v11 = vsel %vm1510_vm9, %v1499_v4, %v2457_v2  ;;  %v1517_v15 = vsel %vm1510_vm9, %v1484_v55, %v2461_v31  ;;  %v1518_v6 = vsel %vm1510_vm9, %v1485_v32, %v2462_v14 }
 0x134   : > { %v3988_v39 = vpop.permute.xlu1 %2464  ;;  %v2470_v47 = vpop.permute.xlu0 %2469 }
 0x135   : > { %v2472_v21 = vunpack.i.h.bf16 %v2470_v47  ;;  %v2471_v9 = vunpack.i.l.bf16 %v2470_v47  ;;  %v2467_v19 = vunpack.i.h.bf16 %v3988_v39  ;;  %v2466_v42 = vunpack.i.l.bf16 %v3988_v39 }
 0x137   : > { %v1548_v17 = vsel %vm1543_vm10, %v1515_v57, %v2471_v9  ;;  %v1549_v53 = vsel %vm1543_vm10, %v1516_v29, %v2472_v21  ;;  %v1533_v18 = vsel %vm1510_vm9, %v1500_v13, %v2466_v42  ;;  %v1534_v2 = vsel %vm1510_vm9, %v1501_v10, %v2467_v19 }
 0x138   : > { %v2475_v12 = vpop.permute.xlu1 %2474  ;;  %v2480_v45 = vpop.permute.xlu0 %2479 }
 0x139   : > { %v2476_v16 = vunpack.i.l.bf16 %v2475_v12  ;;  %v2477_v50 = vunpack.i.h.bf16 %v2475_v12  ;;  %v2482_v8 = vunpack.i.h.bf16 %v2480_v45  ;;  %v2481_v33 = vunpack.i.l.bf16 %v2480_v45 }
 0x13b   : > { %v1564_v24 = vsel %vm1543_vm10, %v1531_v35, %v2476_v16  ;;  %v1565_v58 = vsel %vm1543_vm10, %v1532_v11, %v2477_v50  ;;  %v1550_v37 = vsel %vm1543_vm10, %v1517_v15, %v2481_v33  ;;  %v1551_v39 = vsel %vm1543_vm10, %v1518_v6, %v2482_v8 }
 0x13c   : > { %v2485_v44 = vpop.permute.xlu1 %2484  ;;  %v2490_v43 = vpop.permute.xlu0 %2489 }
 0x13d   : > { %v2492_v5 = vunpack.i.h.bf16 %v2490_v43  ;;  %v2491_v40 = vunpack.i.l.bf16 %v2490_v43  ;;  %v2487_v61 = vunpack.i.h.bf16 %v2485_v44  ;;  %v2486_v54 = vunpack.i.l.bf16 %v2485_v44 }
 0x13f   : > { %v1581_v52 = vsel %vm1576_vm11, %v1548_v17, %v2491_v40  ;;  %v1582_v63 = vsel %vm1576_vm11, %v1549_v53, %v2492_v5  ;;  %v1566_v4 = vsel %vm1543_vm10, %v1533_v18, %v2486_v54  ;;  %v1567_v55 = vsel %vm1543_vm10, %v1534_v2, %v2487_v61 }
 0x140   : > { %v2495_v56 = vpop.permute.xlu1 %2494  ;;  %v1611_v22 = vpack.c.bf16 %v1582_v63, %v1581_v52  ;;  %v2500_v7 = vpop.permute.xlu0 %2499 }
 0x141   : > { %v2497_v47 = vunpack.i.h.bf16 %v2495_v56  ;;  %v2496_v59 = vunpack.i.l.bf16 %v2495_v56  ;;  %v2502_v30 = vunpack.i.h.bf16 %v2500_v7  ;;  %v2501_v48 = vunpack.i.l.bf16 %v2500_v7 }
 0x142   : > { %2015 = vmatprep.mubr.msk.bf16.mxu0 %vm1652_vm12, %v1611_v22 }
 0x143   : > { %v1597_v46 = vsel %vm1576_vm11, %v1564_v24, %v2496_v59  ;;  %v1598_v0 = vsel %vm1576_vm11, %v1565_v58, %v2497_v47  ;;  %v1583_v1 = vsel %vm1576_vm11, %v1550_v37, %v2501_v48  ;;  %v1584_v12 = vsel %vm1576_vm11, %v1551_v39, %v2502_v30 }
 0x144   : > { %v1619_v27 = vpack.c.bf16 %v1598_v0, %v1597_v46  ;;  %v2505_v38 = vpop.permute.xlu1 %2504  ;;  %v1612_v25 = vpack.c.bf16 %v1584_v12, %v1583_v1  ;;  %v2510_v20 = vpop.permute.xlu0 %2509 }
 0x145   : > { %v2507_v31 = vunpack.i.h.bf16 %v2505_v38  ;;  %v2506_v45 = vunpack.i.l.bf16 %v2505_v38  ;;  %v2512_v11 = vunpack.i.h.bf16 %v2510_v20  ;;  %v2511_v15 = vunpack.i.l.bf16 %v2510_v20 }
 0x146   : > { %2031 = vmatprep.mubr.msk.bf16.mxu1 %vm1652_vm12, %v1619_v27  ;;  %2016 = vmatmul.mubr.msk.bf16.gmra.mrb[4].mxu0 %vm1652_vm12, %v1612_v25 }
 0x147   : > { %v1599_v14 = vsel %vm1576_vm11, %v1566_v4, %v2506_v45  ;;  %v1600_v32 = vsel %vm1576_vm11, %v1567_v55, %v2507_v31  ;;  %v1453_v8 = vsel %vm1444_vm7, %v3621_v49, %v2511_v15  ;;  %v1454_v33 = vsel %vm1444_vm7, %v3625_v26, %v2512_v11 }
 0x148   : > { %v1620_v13 = vpack.c.bf16 %v1600_v32, %v1599_v14  ;;  %v2515_v21 = vpop.permute.xlu1 %2514  ;;  %v2520_v9 = vpop.permute.xlu0 %2519 }
 0x149   : > { %v2517_v43 = vunpack.i.h.bf16 %v2515_v21  ;;  %v2516_v6 = vunpack.i.l.bf16 %v2515_v21  ;;  %v2522_v19 = vunpack.i.h.bf16 %v2520_v9  ;;  %v2521_v40 = vunpack.i.l.bf16 %v2520_v9 }
 0x14a   : > { %2032 = vmatmul.mubr.msk.bf16.gmra.mrb[4].mxu1 %vm1652_vm12, %v1620_v13 }
 0x14b   : > { %v1469_v52 = vsel %vm1444_vm7, %v3677_v51, %v2516_v6  ;;  %v1470_v63 = vsel %vm1444_vm7, %v3681_v41, %v2517_v43  ;;  %v1456_v56 = vsel %vm1444_vm7, %v3635_v28, %v2522_v19  ;;  %v1455_v49 = vsel %vm1444_vm7, %v3631_v3, %v2521_v40 }
 0x14c   : > { %v2525_v10 = vpop.permute.xlu1 %2524  ;;  %v2530_v57 = vpop.permute.xlu0 %2529 }
 0x14d   : > { %v2527_v17 = vunpack.i.h.bf16 %v2525_v10  ;;  %v2526_v53 = vunpack.i.l.bf16 %v2525_v10  ;;  %v2531_v42 = vunpack.i.l.bf16 %v2530_v57  ;;  %v2532_v58 = vunpack.i.h.bf16 %v2530_v57 }
 0x14f   : > { %v1471_v7 = vsel %vm1444_vm7, %v3687_v23, %v2526_v53  ;;  %v1472_v51 = vsel %vm1444_vm7, %v3691_v36, %v2527_v17  ;;  %v1486_v41 = vsel %vm1477_vm8, %v1453_v8, %v2531_v42  ;;  %v1487_v39 = vsel %vm1477_vm8, %v1454_v33, %v2532_v58 }
 0x150   : > { %v2535_v29 = vpop.permute.xlu1 %2534  ;;  %v2540_v16 = vpop.permute.xlu0 %2539 }
 0x151   : > { %v2537_v47 = vunpack.i.h.bf16 %v2535_v29  ;;  %v2536_v59 = vunpack.i.l.bf16 %v2535_v29  ;;  %v2541_v26 = vunpack.i.l.bf16 %v2540_v16  ;;  %v2542_v61 = vunpack.i.h.bf16 %v2540_v16 }
 0x153   : > { %v1502_v27 = vsel %vm1477_vm8, %v1469_v52, %v2536_v59  ;;  %v1503_v23 = vsel %vm1477_vm8, %v1470_v63, %v2537_v47  ;;  %v1488_v36 = vsel %vm1477_vm8, %v1455_v49, %v2541_v26  ;;  %v1489_v12 = vsel %vm1477_vm8, %v1456_v56, %v2542_v61 }
 0x154   : > { %v2545_v44 = vpop.permute.xlu1 %2544  ;;  %v2550_v35 = vpop.permute.xlu0 %2549 }
 0x155   : > { %v2546_v54 = vunpack.i.l.bf16 %v2545_v44  ;;  %v2547_v30 = vunpack.i.h.bf16 %v2545_v44  ;;  %v2552_v28 = vunpack.i.h.bf16 %v2550_v35  ;;  %v2551_v48 = vunpack.i.l.bf16 %v2550_v35 }
 0x157   : > { %v1504_v38 = vsel %vm1477_vm8, %v1471_v7, %v2546_v54  ;;  %v1505_v31 = vsel %vm1477_vm8, %v1472_v51, %v2547_v30  ;;  %v1519_v45 = vsel %vm1510_vm9, %v1486_v41, %v2551_v48  ;;  %v1520_v20 = vsel %vm1510_vm9, %v1487_v39, %v2552_v28 }
 0x158   : > { %v2555_v50 = vpop.permute.xlu1 %2554  ;;  %v2560_v5 = vpop.permute.xlu0 %2559 }
 0x159   : > { %v2557_v3 = vunpack.i.h.bf16 %v2555_v50  ;;  %v2556_v46 = vunpack.i.l.bf16 %v2555_v50  ;;  %v2561_v0 = vunpack.i.l.bf16 %v2560_v5  ;;  %v2562_v1 = vunpack.i.h.bf16 %v2560_v5 }
 0x15b   : > { %v1535_v14 = vsel %vm1510_vm9, %v1502_v27, %v2556_v46  ;;  %v1536_v32 = vsel %vm1510_vm9, %v1503_v23, %v2557_v3  ;;  %v1521_v13 = vsel %vm1510_vm9, %v1488_v36, %v2561_v0  ;;  %v1522_v10 = vsel %vm1510_vm9, %v1489_v12, %v2562_v1 }
 0x15c   : > { %v4050_v24 = vpop.permute.xlu1 %2564  ;;  %v2570_v22 = vpop.permute.xlu0 %2569 }
 0x15d   : > { %v2572_v2 = vunpack.i.h.bf16 %v2570_v22  ;;  %v2571_v25 = vunpack.i.l.bf16 %v2570_v22  ;;  %v2567_v57 = vunpack.i.h.bf16 %v4050_v24  ;;  %v2566_v50 = vunpack.i.l.bf16 %v4050_v24 }
 0x15f   : > { %v1552_v44 = vsel %vm1543_vm10, %v1519_v45, %v2571_v25  ;;  %v1553_v35 = vsel %vm1543_vm10, %v1520_v20, %v2572_v2  ;;  %v1537_v47 = vsel %vm1510_vm9, %v1504_v38, %v2566_v50  ;;  %v1538_v61 = vsel %vm1510_vm9, %v1505_v31, %v2567_v57 }
 0x160   : > { %v2575_v37 = vpop.permute.xlu1 %2574  ;;  %v2580_v18 = vpop.permute.xlu0 %2579 }
 0x161   : > { %v2576_v4 = vunpack.i.l.bf16 %v2575_v37  ;;  %v2577_v21 = vunpack.i.h.bf16 %v2575_v37  ;;  %v2582_v11 = vunpack.i.h.bf16 %v2580_v18  ;;  %v2581_v15 = vunpack.i.l.bf16 %v2580_v18 }
 0x163   : > { %v1568_v43 = vsel %vm1543_vm10, %v1535_v14, %v2576_v4  ;;  %v1569_v40 = vsel %vm1543_vm10, %v1536_v32, %v2577_v21  ;;  %v1554_v58 = vsel %vm1543_vm10, %v1521_v13, %v2581_v15  ;;  %v1555_v24 = vsel %vm1543_vm10, %v1522_v10, %v2582_v11 }
 0x164   : > { %v2585_v55 = vpop.permute.xlu1 %2584  ;;  %v2590_v9 = vpop.permute.xlu0 %2589 }
 0x165   : > { %v2592_v29 = vunpack.i.h.bf16 %v2590_v9  ;;  %v2591_v16 = vunpack.i.l.bf16 %v2590_v9  ;;  %v2587_v42 = vunpack.i.h.bf16 %v2585_v55  ;;  %v2586_v52 = vunpack.i.l.bf16 %v2585_v55 }
 0x167   : > { %v1585_v6 = vsel %vm1576_vm11, %v1552_v44, %v2591_v16  ;;  %v1586_v19 = vsel %vm1576_vm11, %v1553_v35, %v2592_v29  ;;  %v1570_v48 = vsel %vm1543_vm10, %v1537_v47, %v2586_v52  ;;  %v1571_v37 = vsel %vm1543_vm10, %v1538_v61, %v2587_v42  ;;  %v4403_v16 = vld [vmem:[#allocation31_spill] sm:$0xff]  ;;  %v4404_v35 = vld [vmem:[#allocation25_spill] sm:$0xff] }
 0x168   : > { %v2595_v5 = vpop.permute.xlu1 %2594  ;;  %v1613_v17 = vpack.c.bf16 %v1586_v19, %v1585_v6  ;;  %v2600_v33 = vpop.permute.xlu0 %2599 }
 0x169   : > { %v2597_v53 = vunpack.i.h.bf16 %v2595_v5  ;;  %v2596_v8 = vunpack.i.l.bf16 %v2595_v5  ;;  %v2602_v63 = vunpack.i.h.bf16 %v2600_v33  ;;  %v2601_v56 = vunpack.i.l.bf16 %v2600_v33  ;;  %v4406_v5 = vld [vmem:[#allocation32_spill] sm:$0xff] }
 0x16a   : > { %2019 = vmatprep.mubr.msk.bf16.mxu0 %vm1652_vm12, %v1613_v17  ;;  %v4407_v17 = vld [vmem:[#allocation34_spill] sm:$0xff] }
 0x16b   : > { %v1601_v22 = vsel %vm1576_vm11, %v1568_v43, %v2596_v8  ;;  %v1602_v49 = vsel %vm1576_vm11, %v1569_v40, %v2597_v53  ;;  %v1587_v26 = vsel %vm1576_vm11, %v1554_v58, %v2601_v56  ;;  %v1588_v7 = vsel %vm1576_vm11, %v1555_v24, %v2602_v63  ;;  %v4405_v43 = vld [vmem:[#allocation12_spill] sm:$0xff] }
 0x16c   : > { %v1621_v59 = vpack.c.bf16 %v1602_v49, %v1601_v22  ;;  %v2605_v51 = vpop.permute.xlu1 %2604  ;;  %v1614_v54 = vpack.c.bf16 %v1588_v7, %v1587_v26  ;;  %v2610_v28 = vpop.permute.xlu0 %2609 }
 0x16d   : > { %v2607_v41 = vunpack.i.h.bf16 %v2605_v51  ;;  %v2606_v30 = vunpack.i.l.bf16 %v2605_v51  ;;  %v2612_v2 = vunpack.i.h.bf16 %v2610_v28  ;;  %v2611_v25 = vunpack.i.l.bf16 %v2610_v28 }
 0x16e   : > { %2035 = vmatprep.mubr.msk.bf16.mxu1 %vm1652_vm12, %v1621_v59  ;;  %2020 = vmatmul.mubr.msk.bf16.gmra.mrb[8].mxu0 %vm1652_vm12, %v1614_v54 }
 0x16f   : > { %v1603_v39 = vsel %vm1576_vm11, %v1570_v48, %v2606_v30  ;;  %v1604_v3 = vsel %vm1576_vm11, %v1571_v37, %v2607_v41  ;;  %v1457_v21 = vsel %vm1444_vm7, %v3641_v34, %v2611_v25  ;;  %v1458_v9 = vsel %vm1444_vm7, %v3645_v62, %v2612_v2 }
 0x170   : > { %v1622_v46 = vpack.c.bf16 %v1604_v3, %v1603_v39  ;;  %v2615_v0 = vpop.permute.xlu1 %2614  ;;  %v2620_v18 = vpop.permute.xlu0 %2619 }
 0x171   : > { %v2617_v45 = vunpack.i.h.bf16 %v2615_v0  ;;  %v2616_v20 = vunpack.i.l.bf16 %v2615_v0  ;;  %v2622_v4 = vunpack.i.h.bf16 %v2620_v18  ;;  %v2621_v14 = vunpack.i.l.bf16 %v2620_v18 }
 0x172   : > { %2036 = vmatmul.mubr.msk.bf16.gmra.mrb[8].mxu1 %vm1652_vm12, %v1622_v46 }
 0x173   : > { %v1473_v29 = vsel %vm1444_vm7, %v3698_v60, %v2616_v20  ;;  %v1474_v44 = vsel %vm1444_vm7, %v4403_v16, %v2617_v45  ;;  %v1460_v11 = vsel %vm1444_vm7, %v4404_v35, %v2622_v4  ;;  %v1459_v34 = vsel %vm1444_vm7, %v4405_v43, %v2621_v14 }
 0x174   : > { %v2625_v27 = vpop.permute.xlu1 %2624  ;;  %v2630_v23 = vpop.permute.xlu0 %2629 }
 0x175   : > { %v2627_v32 = vunpack.i.h.bf16 %v2625_v27  ;;  %v2626_v13 = vunpack.i.l.bf16 %v2625_v27  ;;  %v2631_v10 = vunpack.i.l.bf16 %v2630_v23  ;;  %v2632_v15 = vunpack.i.h.bf16 %v2630_v23 }
 0x177   : > { %v1475_v40 = vsel %vm1444_vm7, %v4406_v5, %v2626_v13  ;;  %v1476_v60 = vsel %vm1444_vm7, %v4407_v17, %v2627_v32  ;;  %v1490_v33 = vsel %vm1477_vm8, %v1457_v21, %v2631_v10  ;;  %v1491_v58 = vsel %vm1477_vm8, %v1458_v9, %v2632_v15 }
 0x178   : > { %v2635_v36 = vpop.permute.xlu1 %2634  ;;  %v2640_v1 = vpop.permute.xlu0 %2639 }
 0x179   : > { %v2637_v6 = vunpack.i.h.bf16 %v2635_v36  ;;  %v2636_v19 = vunpack.i.l.bf16 %v2635_v36  ;;  %v2641_v62 = vunpack.i.l.bf16 %v2640_v1  ;;  %v2642_v53 = vunpack.i.h.bf16 %v2640_v1 }
 0x17b   : > { %v1506_v59 = vsel %vm1477_vm8, %v1473_v29, %v2636_v19  ;;  %v1507_v26 = vsel %vm1477_vm8, %v1474_v44, %v2637_v6  ;;  %v1492_v7 = vsel %vm1477_vm8, %v1459_v34, %v2641_v62  ;;  %v1493_v61 = vsel %vm1477_vm8, %v1460_v11, %v2642_v53 }
 0x17c   : > { %v2645_v12 = vpop.permute.xlu1 %2644  ;;  %v2650_v38 = vpop.permute.xlu0 %2649 }
 0x17d   : > { %v2646_v8 = vunpack.i.l.bf16 %v2645_v12  ;;  %v2647_v42 = vunpack.i.h.bf16 %v2645_v12  ;;  %v2652_v52 = vunpack.i.h.bf16 %v2650_v38  ;;  %v2651_v63 = vunpack.i.l.bf16 %v2650_v38 }
 0x17f   : > { %v1508_v54 = vsel %vm1477_vm8, %v1475_v40, %v2646_v8  ;;  %v1509_v28 = vsel %vm1477_vm8, %v1476_v60, %v2647_v42  ;;  %v1523_v48 = vsel %vm1510_vm9, %v1490_v33, %v2651_v63  ;;  %v1524_v37 = vsel %vm1510_vm9, %v1491_v58, %v2652_v52 }
 0x180   : > { %v2655_v31 = vpop.permute.xlu1 %2654  ;;  %v2660_v55 = vpop.permute.xlu0 %2659 }
 0x181   : > { %v2657_v24 = vunpack.i.h.bf16 %v2655_v31  ;;  %v2656_v22 = vunpack.i.l.bf16 %v2655_v31  ;;  %v2661_v49 = vunpack.i.l.bf16 %v2660_v55  ;;  %v2662_v51 = vunpack.i.h.bf16 %v2660_v55 }
 0x183   : > { %v1539_v46 = vsel %vm1510_vm9, %v1506_v59, %v2656_v22  ;;  %v1540_v0 = vsel %vm1510_vm9, %v1507_v26, %v2657_v24  ;;  %v1525_v18 = vsel %vm1510_vm9, %v1492_v7, %v2661_v49  ;;  %v1526_v36 = vsel %vm1510_vm9, %v1493_v61, %v2662_v51 }
 0x184   : > { %v4106_v57 = vpop.permute.xlu1 %2664  ;;  %v2670_v50 = vpop.permute.xlu0 %2669 }
 0x185   : > { %v2672_v41 = vunpack.i.h.bf16 %v2670_v50  ;;  %v2671_v30 = vunpack.i.l.bf16 %v2670_v50  ;;  %v2667_v1 = vunpack.i.h.bf16 %v4106_v57  ;;  %v2666_v20 = vunpack.i.l.bf16 %v4106_v57 }
 0x187   : > { %v1556_v2 = vsel %vm1543_vm10, %v1523_v48, %v2671_v30  ;;  %v1557_v25 = vsel %vm1543_vm10, %v1524_v37, %v2672_v41  ;;  %v1541_v34 = vsel %vm1510_vm9, %v1508_v54, %v2666_v20  ;;  %v1542_v40 = vsel %vm1510_vm9, %v1509_v28, %v2667_v1 }
 0x188   : > { %v2675_v56 = vpop.permute.xlu1 %2674  ;;  %v2680_v47 = vpop.permute.xlu0 %2679 }
 0x189   : > { %v2676_v39 = vunpack.i.l.bf16 %v2675_v56  ;;  %v2677_v27 = vunpack.i.h.bf16 %v2675_v56  ;;  %v2682_v31 = vunpack.i.h.bf16 %v2680_v47  ;;  %v2681_v45 = vunpack.i.l.bf16 %v2680_v47  ;;  %v4161_v56 = vld [vmem:[%s4239_s2] ss:$0 sm:$0xff] }
 0x18b   : > { %v1572_v4 = vsel %vm1543_vm10, %v1539_v46, %v2676_v39  ;;  %v1573_v13 = vsel %vm1543_vm10, %v1540_v0, %v2677_v27  ;;  %v1558_v15 = vsel %vm1543_vm10, %v1525_v18, %v2681_v45  ;;  %v1559_v57 = vsel %vm1543_vm10, %v1526_v36, %v2682_v31 }
 0x18c   : > { %v2685_v3 = vpop.permute.xlu1 %2684  ;;  %v2690_v23 = vpop.permute.xlu0 %2689 }
 0x18d   : > { %v2692_v12 = vunpack.i.h.bf16 %v2690_v23  ;;  %v2691_v38 = vunpack.i.l.bf16 %v2690_v23  ;;  %v2687_v16 = vunpack.i.h.bf16 %v2685_v3  ;;  %v2686_v44 = vunpack.i.l.bf16 %v2685_v3 }
 0x18f   : > { %v1589_v55 = vsel %vm1576_vm11, %v1556_v2, %v2691_v38  ;;  %v1590_v14 = vsel %vm1576_vm11, %v1557_v25, %v2692_v12  ;;  %v1574_v8 = vsel %vm1543_vm10, %v1541_v34, %v2686_v44  ;;  %v1575_v33 = vsel %vm1543_vm10, %v1542_v40, %v2687_v16 }
 0x190   : > { %v2695_v32 = vpop.permute.xlu1 %2694  ;;  %v1615_v21 = vpack.c.bf16 %v1590_v14, %v1589_v55  ;;  %v2700_v29 = vpop.permute.xlu0 %2699 }
 0x191   : > { %v2697_v9 = vunpack.i.h.bf16 %v2695_v32  ;;  %v2696_v10 = vunpack.i.l.bf16 %v2695_v32  ;;  %v2702_v35 = vunpack.i.h.bf16 %v2700_v29  ;;  %v2701_v11 = vunpack.i.l.bf16 %v2700_v29 }
 0x192   : > { %2023 = vmatprep.mubr.msk.bf16.mxu0 %vm1652_vm12, %v1615_v21 }
 0x193   : > { %v1605_v50 = vsel %vm1576_vm11, %v1572_v4, %v2696_v10  ;;  %v1606_v43 = vsel %vm1576_vm11, %v1573_v13, %v2697_v9  ;;  %v1591_v19 = vsel %vm1576_vm11, %v1558_v15, %v2701_v11  ;;  %v1592_v62 = vsel %vm1576_vm11, %v1559_v57, %v2702_v35 }
 0x194   : > { %v1623_v6 = vpack.c.bf16 %v1606_v43, %v1605_v50  ;;  %v2705_v5 = vpop.permute.xlu1 %2704  ;;  %v1616_v17 = vpack.c.bf16 %v1592_v62, %v1591_v19 }
 0x195   : > { %v2707_v60 = vunpack.i.h.bf16 %v2705_v5  ;;  %v2706_v53 = vunpack.i.l.bf16 %v2705_v5 }
 0x196   : > { %2039 = vmatprep.mubr.msk.bf16.mxu1 %vm1652_vm12, %v1623_v6  ;;  %2024 = vmatmul.mubr.msk.bf16.gmra.mrb[12].mxu0 %vm1652_vm12, %v1616_v17 }
 0x197   : > { %v1607_v42 = vsel %vm1576_vm11, %v1574_v8, %v2706_v53  ;;  %v1608_v52 = vsel %vm1576_vm11, %v1575_v33, %v2707_v60 }
 0x198   : > { %v1624_v63 = vpack.c.bf16 %v1608_v52, %v1607_v42 }
 0x19a   : > { %2040 = vmatmul.mubr.msk.bf16.gmra.mrb[12].mxu1 %vm1652_vm12, %v1624_v63 }
 0x1f6   : > { %v2013_v58 = vpop.f32.mrb[0].mxu0 }
 0x1f7   : > { %v1748_v24 = vadd.f32 %v2013_v58, %v4161_v56  ;;  %v1739_v22 = vpop.f32.mrb[1].mxu0 }
 0x1f8   : > { %v1740_v49 = vadd.f32 %v4161_v56, %v1739_v22  ;;  %v2014_v47 = vpop.f32.mrb[2].mxu0 }
 0x1f9   : > { %1868 = vst [vmem:[%s4168_s9 + $0x10] sm:$0xff] %v1748_v24  ;;  %v1751_v59 = vadd.f32 %v2014_v47, %v4161_v56  ;;  %v1742_v26 = vpop.f32.mrb[3].mxu0  ;;  %v2029_v7 = vpop.f32.mrb[0].mxu1 }
 0x1fa   : > { %1866 = vst [vmem:[%s4168_s9] sm:$0xff] %v1740_v49  ;;  %v1743_v51 = vadd.f32 %v4161_v56, %v1742_v26  ;;  %v1812_v61 = vadd.f32 %v2029_v7, %v4161_v56  ;;  %v1803_v54 = vpop.f32.mrb[1].mxu1 }
 0x1fb   : > { %1869 = vst [vmem:[%s4168_s9 + $0x18] sm:$0xff] %v1751_v59  ;;  %v1804_v41 = vadd.f32 %v4161_v56, %v1803_v54  ;;  %v2030_v30 = vpop.f32.mrb[2].mxu1 }
 0x1fc   : > { %1867 = vst [vmem:[%s4168_s9 + $0x8] sm:$0xff] %v1743_v51  ;;  %1884 = vst [vmem:[%s4168_s9 + $0x90] sm:$0xff] %v1812_v61  ;;  %v1815_v28 = vadd.f32 %v2030_v30, %v4161_v56  ;;  %v1806_v48 = vpop.f32.mrb[3].mxu1 }
 0x1fd   : > { %1882 = vst [vmem:[%s4168_s9 + $0x80] sm:$0xff] %v1804_v41  ;;  %v1807_v37 = vadd.f32 %v4161_v56, %v1806_v48 }
 0x1fe   : > { %1885 = vst [vmem:[%s4168_s9 + $0x98] sm:$0xff] %v1815_v28 }
 0x1ff   : > { %1883 = vst [vmem:[%s4168_s9 + $0x88] sm:$0xff] %v1807_v37 }
 0x219   : > { %v2017_v39 = vpop.f32.mrb[4].mxu0 }
 0x21a   : > { %v1764_v3 = vadd.f32 %v2017_v39, %v4161_v56  ;;  %v1755_v46 = vpop.f32.mrb[5].mxu0 }
 0x21b   : > { %v1756_v0 = vadd.f32 %v4161_v56, %v1755_v46  ;;  %v2018_v18 = vpop.f32.mrb[6].mxu0 }
 0x21c   : > { %1872 = vst [vmem:[%s4168_s9 + $0x30] sm:$0xff] %v1764_v3  ;;  %v1767_v27 = vadd.f32 %v2018_v18, %v4161_v56  ;;  %v1758_v23 = vpop.f32.mrb[7].mxu0 }
 0x21d   : > { %v2033_v36 = vpop.f32.mrb[4].mxu1  ;;  %1870 = vst [vmem:[%s4168_s9 + $0x20] sm:$0xff] %v1756_v0  ;;  %v1759_v1 = vadd.f32 %v4161_v56, %v1758_v23 }
 0x21e   : > { %v1828_v12 = vadd.f32 %v2033_v36, %v4161_v56  ;;  %v1819_v38 = vpop.f32.mrb[5].mxu1  ;;  %1873 = vst [vmem:[%s4168_s9 + $0x38] sm:$0xff] %v1767_v27 }
 0x21f   : > { %v1820_v2 = vadd.f32 %v4161_v56, %v1819_v38  ;;  %v2034_v25 = vpop.f32.mrb[6].mxu1  ;;  %1871 = vst [vmem:[%s4168_s9 + $0x28] sm:$0xff] %v1759_v1 }
 0x220   : > { %1888 = vst [vmem:[%s4168_s9 + $0xb0] sm:$0xff] %v1828_v12  ;;  %v1831_v31 = vadd.f32 %v2034_v25, %v4161_v56  ;;  %v1822_v45 = vpop.f32.mrb[7].mxu1 }
 0x221   : > { %1886 = vst [vmem:[%s4168_s9 + $0xa0] sm:$0xff] %v1820_v2  ;;  %v1823_v20 = vadd.f32 %v4161_v56, %v1822_v45 }
 0x222   : > { %1889 = vst [vmem:[%s4168_s9 + $0xb8] sm:$0xff] %v1831_v31 }
 0x223   : > { %1887 = vst [vmem:[%s4168_s9 + $0xa8] sm:$0xff] %v1823_v20 }
 0x241   : > { %v2021_v4 = vpop.f32.mrb[8].mxu0 }
 0x242   : > { %v1780_v55 = vadd.f32 %v2021_v4, %v4161_v56  ;;  %v1771_v14 = vpop.f32.mrb[9].mxu0 }
 0x243   : > { %v1772_v32 = vadd.f32 %v4161_v56, %v1771_v14  ;;  %v2022_v13 = vpop.f32.mrb[10].mxu0 }
 0x244   : > { %1876 = vst [vmem:[%s4168_s9 + $0x50] sm:$0xff] %v1780_v55  ;;  %v1783_v21 = vadd.f32 %v2022_v13, %v4161_v56  ;;  %v1774_v9 = vpop.f32.mrb[11].mxu0 }
 0x245   : > { %v2037_v10 = vpop.f32.mrb[8].mxu1  ;;  %1874 = vst [vmem:[%s4168_s9 + $0x40] sm:$0xff] %v1772_v32  ;;  %v1775_v29 = vadd.f32 %v4161_v56, %v1774_v9 }
 0x246   : > { %v1844_v16 = vadd.f32 %v2037_v10, %v4161_v56  ;;  %v1835_v44 = vpop.f32.mrb[9].mxu1  ;;  %1877 = vst [vmem:[%s4168_s9 + $0x58] sm:$0xff] %v1783_v21 }
 0x247   : > { %v1836_v35 = vadd.f32 %v4161_v56, %v1835_v44  ;;  %v2038_v11 = vpop.f32.mrb[10].mxu1  ;;  %1875 = vst [vmem:[%s4168_s9 + $0x48] sm:$0xff] %v1775_v29 }
 0x248   : > { %1892 = vst [vmem:[%s4168_s9 + $0xd0] sm:$0xff] %v1844_v16  ;;  %v1847_v15 = vadd.f32 %v2038_v11, %v4161_v56  ;;  %v1838_v57 = vpop.f32.mrb[11].mxu1 }
 0x249   : > { %1890 = vst [vmem:[%s4168_s9 + $0xc0] sm:$0xff] %v1836_v35  ;;  %v1839_v50 = vadd.f32 %v4161_v56, %v1838_v57 }
 0x24a   : > { %1893 = vst [vmem:[%s4168_s9 + $0xd8] sm:$0xff] %v1847_v15 }
 0x24b   : > { %1891 = vst [vmem:[%s4168_s9 + $0xc8] sm:$0xff] %v1839_v50 }
 0x269   : > { %v2025_v43 = vpop.f32.mrb[12].mxu0 }
 0x26a   : > { %v1796_v34 = vadd.f32 %v2025_v43, %v4161_v56  ;;  %v1787_v6 = vpop.f32.mrb[13].mxu0 }
 0x26b   : > { %v1788_v19 = vadd.f32 %v4161_v56, %v1787_v6  ;;  %v2026_v62 = vpop.f32.mrb[14].mxu0 }
 0x26c   : > { %1880 = vst [vmem:[%s4168_s9 + $0x70] sm:$0xff] %v1796_v34  ;;  %v1799_v5 = vadd.f32 %v2026_v62, %v4161_v56  ;;  %v1790_v40 = vpop.f32.mrb[15].mxu0 }
 0x26d   : > { %v2041_v17 = vpop.f32.mrb[12].mxu1  ;;  %1878 = vst [vmem:[%s4168_s9 + $0x60] sm:$0xff] %v1788_v19  ;;  %v1791_v60 = vadd.f32 %v4161_v56, %v1790_v40 }
 0x26e   : > { %v1860_v53 = vadd.f32 %v2041_v17, %v4161_v56  ;;  %v1851_v8 = vpop.f32.mrb[13].mxu1  ;;  %1881 = vst [vmem:[%s4168_s9 + $0x78] sm:$0xff] %v1799_v5 }
 0x26f   : > { %v1852_v33 = vadd.f32 %v4161_v56, %v1851_v8  ;;  %v2042_v42 = vpop.f32.mrb[14].mxu1  ;;  %1879 = vst [vmem:[%s4168_s9 + $0x68] sm:$0xff] %v1791_v60 }
 0x270   : > { %1896 = vst [vmem:[%s4168_s9 + $0xf0] sm:$0xff] %v1860_v53  ;;  %v1863_v52 = vadd.f32 %v2042_v42, %v4161_v56  ;;  %v1854_v63 = vpop.f32.mrb[15].mxu1 }
 0x271   : > { %1894 = vst [vmem:[%s4168_s9 + $0xe0] sm:$0xff] %v1852_v33  ;;  %v1855_v58 = vadd.f32 %v4161_v56, %v1854_v63 }
 0x272   : > { %1897 = vst [vmem:[%s4168_s9 + $0xf8] sm:$0xff] %v1863_v52 }
 0x273   : > { %1895 = vst [vmem:[%s4168_s9 + $0xe8] sm:$0xff] %v1855_v58 }
 0x274 PF: > { %s13_s12 = sadd.s32 1, %s2717_s12  }
 0x275   : > { %p10_p4 = scmp.ge.s32.totalorder %s13_s12, 4  }
 0x277   :  { %12 = sbr.rel (!%p10_p4) target bundleno = 1 (0x1), region = 62 }

</bundles_post_ra>
